<compile_context>
chip_gen: v6e
topology: v6e:2x2x1
jax: 0.10.0
libtpu: 0.0.40
codegen_flags: <defaults>
</compile_context>

<pallas_src>
import functools

import numpy as np

import jax
import jax.numpy as jnp
from jax.experimental import pallas as pl
from jax.experimental.pallas import tpu as pltpu


BLK = 8                        # batch rows per grid step (sublane-aligned)

# Visual-stream matmuls run with bf16 MXU operands (f32 accumulation): native MXU dtype
# on all three generations and half the vis HBM/VMEM bytes at real scale.
_VIS_DTYPE = jnp.bfloat16
# The LSTM recurrence stays f32: re-casting h to bf16 every step would compound rounding
# across 16 dependent steps (review correctness concern).  Flip to bf16 only after
# re-validating tolerances at the real hidden size.
_LSTM_DTYPE = jnp.float32


def _mm_f32(a, b):
    return jnp.dot(a.astype(_LSTM_DTYPE), b.astype(_LSTM_DTYPE),
                   preferred_element_type=jnp.float32)


def _mm_vis(a, b):
    return jnp.dot(a.astype(_VIS_DTYPE), b.astype(_VIS_DTYPE),
                   preferred_element_type=jnp.float32)


def _bmm_vis(eq, a, b):
    return jnp.einsum(eq, a.astype(_VIS_DTYPE), b.astype(_VIS_DTYPE),
                      preferred_element_type=jnp.float32)


# ----------------------------------------------------------------------------
# Fused kernel: 2-layer LSTM text encoder + text-conditioned visual attention
# (one 8-row batch block per grid step)
# ----------------------------------------------------------------------------
def _duo_stream_kernel(x_ref,                                   # (S, BLK, E) f32 text
                       wih1_ref, whh1_ref, b1_ref,              # (E,G4), (H,G4), (1,G4)
                       w2cat_ref, b2_ref,                       # (2H,G4) = [[wih2],[whh2]], (1,G4)
                       wout_ref, bout_ref,                      # (H,Op), (1,Op)
                       vis_ref,                                 # (BLK, T, D) bf16
                       wvt_ref, wt_ref,                         # (H,D)=wv^T bf16, (E,H) bf16
                       txt_ref, attn_ref, attvis_ref, pos_ref,  # outputs (f32)
                       *, h_dim):
    S, blk, E = x_ref.shape
    H = h_dim
    G4 = whh1_ref.shape[1]
    T = vis_ref.shape[1]

    x = x_ref[...]                                              # (S, BLK, E) f32

    # ---------------- Language encoder: 2-layer LSTM, interleaved ----------------
    # Layer-1 input projection hoisted out of the recurrence: one (S*BLK,E)@(E,G4) matmul.
    xproj1 = (_mm_f32(x.reshape(S * blk, E), wih1_ref[...]) + b1_ref[...]
              ).reshape(S, blk, G4)
    whh1 = whh1_ref[...]
    w2cat = w2cat_ref[...]
    # Hoisted broadcast (JAX does not CSE broadcast_in_dim inside the unrolled loop).
    b2b = jnp.broadcast_to(b2_ref[...], (blk, G4))

    def cell(gates, c):
        # Gates keep the concatenated [i|f|g|o] layout at real-H offsets inside one
        # 128-multiple lane slab (no per-gate lane padding on the recurrent path).
        i = jax.nn.sigmoid(gates[:, 0 * H:1 * H])
        f = jax.nn.sigmoid(gates[:, 1 * H:2 * H])
        g = jnp.tanh(gates[:, 2 * H:3 * H])
        o = jax.nn.sigmoid(gates[:, 3 * H:4 * H])
        c = f * c + i * g
        return o * jnp.tanh(c), c

    z = jnp.zeros((blk, H), jnp.float32)
    h1, c1, h2, c2 = z, z, z, z
    # Pipeline step p: layer-1 advances to time p while layer-2 advances to time p-1.
    # The two recurrent matmuls inside a step are independent, so the MXU overlaps them:
    # serial chain of 16 dependent matmuls -> S+1 = 9 pipeline steps.  S=8 is a fixed
    # constant, so the loop is fully unrolled for the LLO scheduler.
    for p in range(S + 1):
        h1n, c1n = h1, c1
        if p < S:
            h1n, c1n = cell(xproj1[p] + _mm_f32(h1, whh1), c1)
        if p >= 1:
            # layer-2 gates = [h1_{p-1}, h2_{p-2}] @ [[wih2],[whh2]] + b2 (one matmul).
            hcat = jnp.concatenate([h1, h2], axis=1)            # (BLK, 2H)
            h2, c2 = cell(_mm_f32(hcat, w2cat) + b2b, c2)
        h1, c1 = h1n, c1n

    txt_ref[...] = _mm_f32(h2, wout_ref[...]) + bout_ref[...]   # (BLK, Op)

    # ---------------- Visual model: text-conditioned soft attention ----------------
    vis = vis_ref[...]                                          # (BLK, T, D) bf16

    tmean = jnp.mean(x, axis=0)                                 # (BLK, E) mean over words
    tfeat = _mm_vis(tmean, wt_ref[...])                         # (BLK, H)
    q = _mm_vis(tfeat, wvt_ref[...])                            # (BLK, D) == tfeat @ wv^T

    # scores[b, t] = <vis[b, t, :], q[b, :]> as a batched MXU matmul (no (B,T,H) temp).
    scores = _bmm_vis('bqd,btd->bqt', q[:, None, :], vis)[:, 0, :]   # (BLK, T) f32

    # Stable softmax over the (unpadded) time axis; normalization via the EUP reciprocal.
    m = jnp.max(scores, axis=-1, keepdims=True)
    e = jnp.exp(scores - m)
    attn = e * pl.reciprocal(jnp.sum(e, axis=-1, keepdims=True), approx=True)
    attn_ref[...] = attn

    # Attention pooling + mean pooling over time folded into ONE batched MXU matmul.
    pool = jnp.full((blk, T), 1.0 / T, jnp.float32)
    w2 = jnp.stack([attn, pool], axis=1)                        # (BLK, 2, T)
    pooled = _bmm_vis('bqt,btd->bqd', w2, vis)                  # (BLK, 2, D) f32
    attvis_ref[...] = pooled[:, 0, :]
    pos_ref[...] = pooled[:, 1, :]


# ----------------------------------------------------------------------------
# Padding helpers
# ----------------------------------------------------------------------------
def _round_up(x, m):
    return ((x + m - 1) // m) * m


def _pad_last(a, n):
    pad = n - a.shape[-1]
    if pad == 0:
        return a
    cfg = [(0, 0)] * (a.ndim - 1) + [(0, pad)]
    return jnp.pad(a, cfg)


# ----------------------------------------------------------------------------
# Forward wrapper (mirrors Model.forward)
# ----------------------------------------------------------------------------
def duo_stream_forward(visual_feature, text_emb, params, t_proposals=None, test=False):
    """Returns (attention_weights, visual_feature, textual_feature, pos_feature,
    neg_feature, test_features)."""
    B, T, D = visual_feature.shape
    _, S, E = text_emb.shape
    pt, pv = params["text"], params["visual"]
    H = pt["whh1"].shape[0]
    O = pt["wout"].shape[1]

    Bp = _round_up(B, BLK)                 # batch padded to the 8-row block (no-op at real B)
    G4 = _round_up(4 * H, 128)             # gate lane axis padded only at its tail
    Op = _round_up(O, 128)                 # lane-dense textual output

    # Gate weights keep the concatenated [i|f|g|o] layout; only trailing lanes are padded
    # (no 4x per-gate blow-up of the recurrent matmul / sigmoid lanes).
    wih1 = _pad_last(pt["wih1"], G4)
    whh1 = _pad_last(pt["whh1"], G4)
    b1 = _pad_last(pt["b1"], G4)
    w2cat = _pad_last(jnp.concatenate([pt["wih2"], pt["whh2"]], axis=0), G4)   # (2H, G4)
    b2 = _pad_last(pt["b2"], G4)
    wout = _pad_last(pt["wout"], Op)
    bout = _pad_last(pt["bout"], Op)
    wvt = pv["wv"].T.astype(_VIS_DTYPE)    # (H, D), pre-transposed (no in-kernel transpose)
    wt = pv["wt"].astype(_VIS_DTYPE)       # (E, H)

    # bf16 visual features: MXU-native and half the HBM/VMEM bytes.
    # TODO(synk): at real scale the I3D features should arrive already in bf16 upstream
    # so this cast (and the batch pad below) is a no-op instead of an extra HBM pass.
    vis = visual_feature.astype(_VIS_DTYPE)
    text_p = text_emb
    if Bp != B:
        vis = jnp.pad(vis, ((0, Bp - B), (0, 0), (0, 0)))
        text_p = jnp.pad(text_p, ((0, Bp - B), (0, 0), (0, 0)))
    x_tm = jnp.transpose(text_p, (1, 0, 2))                     # (S, Bp, E) time-major

    def _resident(arr):
        # Weight stays VMEM-resident across the batch grid (constant block index).
        return pl.BlockSpec(arr.shape, lambda i, nd=arr.ndim: (0,) * nd)

    kernel = functools.partial(_duo_stream_kernel, h_dim=H)
    txt_p, attn_p, attvis_p, pos_p = pl.pallas_call(
        kernel,
        out_shape=(
            jax.ShapeDtypeStruct((Bp, Op), jnp.float32),   # textual_feature
            jax.ShapeDtypeStruct((Bp, T), jnp.float32),    # attention_weights
            jax.ShapeDtypeStruct((Bp, D), jnp.float32),    # attended visual_feature
            jax.ShapeDtypeStruct((Bp, D), jnp.float32),    # pos_feature
        ),
        grid=(Bp // BLK,),
        in_specs=[
            pl.BlockSpec((S, BLK, E), lambda i: (0, i, 0)),     # text block
            _resident(wih1), _resident(whh1), _resident(b1),
            _resident(w2cat), _resident(b2),
            _resident(wout), _resident(bout),
            pl.BlockSpec((BLK, T, D), lambda i: (i, 0, 0)),     # visual block
            _resident(wvt), _resident(wt),
        ],
        out_specs=(
            pl.BlockSpec((BLK, Op), lambda i: (i, 0)),
            pl.BlockSpec((BLK, T), lambda i: (i, 0)),
            pl.BlockSpec((BLK, D), lambda i: (i, 0)),
            pl.BlockSpec((BLK, D), lambda i: (i, 0)),
        ),
        compiler_params=pltpu.CompilerParams(
            dimension_semantics=("parallel",)),                 # 2 TCs on v7x
    )(x_tm, wih1, whh1, b1, w2cat, b2, wout, bout, vis, wvt, wt)

    textual_feature = txt_p[:B, :O]
    attn = attn_p[:B, :]
    attended_vis = attvis_p[:B, :]
    pos = pos_p[:B, :]
    # Intra-batch negative: roll over the REAL batch rows (identical to
    # concat([pos[-1:], pos[:-1]])); done here so batch padding cannot corrupt it.
    neg = jnp.roll(pos, shift=1, axis=0)
    test_features = attended_vis if test else None  # TODO(synk): test-path proposals not specified
    return attn, attended_vis, textual_feature, pos, neg, test_features


# ----------------------------------------------------------------------------
# Deterministic parameter init (logical, unpadded shapes)
# ----------------------------------------------------------------------------
def init_params(key, *, E, H, D, O):
    ks = jax.random.split(key, 10)

    def dense(k, fan_in, shape):
        return (jax.random.normal(k, shape, jnp.float32) / jnp.sqrt(fan_in)).astype(jnp.float32)

    text = {
        "wih1": dense(ks[0], E, (E, 4 * H)),
        "whh1": dense(ks[1], H, (H, 4 * H)),
        "b1":   jnp.zeros((1, 4 * H), jnp.float32),
        "wih2": dense(ks[2], H, (H, 4 * H)),
        "whh2": dense(ks[3], H, (H, 4 * H)),
        "b2":   jnp.zeros((1, 4 * H), jnp.float32),
        "wout": dense(ks[4], H, (H, O)),
        "bout": jnp.zeros((1, O), jnp.float32),
    }
    visual = {
        "wv": dense(ks[5], D, (D, H)),
        "wt": dense(ks[6], E, (E, H)),
    }
    return {"text": text, "visual": visual}


# ----------------------------------------------------------------------------
# Pure-JAX reference of the same reconstructed module (mirrors the kernel's bf16
# visual-stream operands so the check validates kernel logic at the chosen precision)
# ----------------------------------------------------------------------------
def _reference_forward(visual_feature, text_emb, params):
    pt, pv = params["text"], params["visual"]
    B, S, _E = text_emb.shape
    H = pt["whh1"].shape[0]

    def lstm(inputs, wih, whh, b):
        h = jnp.zeros((B, H), jnp.float32)
        c = jnp.zeros((B, H), jnp.float32)
        hs = []
        for t in range(S):
            g = inputs[:, t, :] @ wih + h @ whh + b
            i = jax.nn.sigmoid(g[:, :H])
            f = jax.nn.sigmoid(g[:, H:2 * H])
            gg = jnp.tanh(g[:, 2 * H:3 * H])
            o = jax.nn.sigmoid(g[:, 3 * H:])
            c = f * c + i * gg
            h = o * jnp.tanh(c)
            hs.append(h)
        return jnp.stack(hs, axis=1), h

    h1, _ = lstm(text_emb, pt["wih1"], pt["whh1"], pt["b1"])
    _, h2 = lstm(h1, pt["wih2"], pt["whh2"], pt["b2"])
    txt = h2 @ pt["wout"] + pt["bout"]

    vis = visual_feature.astype(_VIS_DTYPE)
    tmean = jnp.mean(text_emb, axis=1)
    tfeat = _mm_vis(tmean, pv["wt"])
    q = _mm_vis(tfeat, pv["wv"].T)
    scores = _bmm_vis('bqd,btd->bqt', q[:, None, :], vis)[:, 0, :]
    scores = scores - jnp.max(scores, axis=-1, keepdims=True)
    e = jnp.exp(scores)
    attn = e / jnp.sum(e, axis=-1, keepdims=True)
    T = scores.shape[-1]
    pool = jnp.full((B, T), 1.0 / T, jnp.float32)
    pooled = _bmm_vis('bqt,btd->bqd', jnp.stack([attn, pool], axis=1), vis)
    attvis = pooled[:, 0, :]
    pos = pooled[:, 1, :]
    neg = jnp.roll(pos, shift=1, axis=0)
    return attn, attvis, txt, pos, neg


if __name__ == "__main__":
    # Small shapes consistent with the module's constructor arguments.
    B = 2        # batch_size
    T = 16       # video time steps
    D = 64       # visual feature dim (stands in for 2048-d I3D)
    S = 8        # text time_steps (module hard-codes 8)
    E = 32       # lstm_input_size (small stand-in for 300-d word vectors)
    H = 32       # hidden_dim
    O = 100      # output_dim (module default)

    key = jax.random.PRNGKey(0)
    k_vis, k_txt, k_par = jax.random.split(key, 3)
    visual_feature = jax.random.normal(k_vis, (B, T, D), jnp.float32)
    text_emb = jax.random.normal(k_txt, (B, S, E), jnp.float32)  # pre-embedded text
    params = init_params(k_par, E=E, H=H, D=D, O=O)

    fwd = jax.jit(duo_stream_forward, static_argnames=("test",))
    attn, vis_out, txt_out, pos, neg, test_features = fwd(visual_feature, text_emb, params)
    for out in (attn, vis_out, txt_out, pos, neg):
        jax.block_until_ready(out)

    assert attn.shape == (B, T)
    assert vis_out.shape == (B, D)
    assert txt_out.shape == (B, O)
    assert pos.shape == (B, D) and neg.shape == (B, D)
    assert test_features is None

    # Numeric check against the pure-JAX reference of the reconstructed module.
    # Tolerance covers the approx (EUP) softmax reciprocal and bf16 operand rounding.
    r_attn, r_vis, r_txt, r_pos, r_neg = _reference_forward(visual_feature, text_emb, params)
    for got, want in ((attn, r_attn), (vis_out, r_vis), (txt_out, r_txt),
                      (pos, r_pos), (neg, r_neg)):
        np.testing.assert_allclose(np.asarray(got), np.asarray(want), rtol=5e-3, atol=5e-3)

    print("KERNEL_OK")
</pallas_src>

<mosaic_0001>
module attributes {stable_mosaic.version = 11 : i64} {
  func.func @_duo_stream_kernel(%arg0: i32, %arg1: memref<8x8x32xf32, #tpu.memory_space<vmem>>, %arg2: memref<32x128xf32, #tpu.memory_space<vmem>>, %arg3: memref<32x128xf32, #tpu.memory_space<vmem>>, %arg4: memref<1x128xf32, #tpu.memory_space<vmem>>, %arg5: memref<64x128xf32, #tpu.memory_space<vmem>>, %arg6: memref<1x128xf32, #tpu.memory_space<vmem>>, %arg7: memref<32x128xf32, #tpu.memory_space<vmem>>, %arg8: memref<1x128xf32, #tpu.memory_space<vmem>>, %arg9: memref<8x16x64xbf16, #tpu.memory_space<vmem>>, %arg10: memref<32x64xbf16, #tpu.memory_space<vmem>>, %arg11: memref<32x32xbf16, #tpu.memory_space<vmem>>, %arg12: memref<8x128xf32, #tpu.memory_space<vmem>>, %arg13: memref<8x16xf32, #tpu.memory_space<vmem>>, %arg14: memref<8x64xf32, #tpu.memory_space<vmem>>, %arg15: memref<8x64xf32, #tpu.memory_space<vmem>>) attributes {dimension_semantics = [#tpu.dimension_semantics<parallel>], iteration_bounds = array<i64: 1>, scalar_prefetch = 0 : i64, scratch_operands = 0 : i64, tpu.core_type = #tpu.core_type<tc>, window_params = [{transform_indices = @transform_0, window_bounds = array<i64: 8, 8, 32>}, {pipeline_mode = #tpu.pipeline_mode<synchronous>, transform_indices = @transform_1, window_bounds = array<i64: 32, 128>}, {pipeline_mode = #tpu.pipeline_mode<synchronous>, transform_indices = @transform_2, window_bounds = array<i64: 32, 128>}, {pipeline_mode = #tpu.pipeline_mode<synchronous>, transform_indices = @transform_3, window_bounds = array<i64: 1, 128>}, {pipeline_mode = #tpu.pipeline_mode<synchronous>, transform_indices = @transform_4, window_bounds = array<i64: 64, 128>}, {pipeline_mode = #tpu.pipeline_mode<synchronous>, transform_indices = @transform_5, window_bounds = array<i64: 1, 128>}, {pipeline_mode = #tpu.pipeline_mode<synchronous>, transform_indices = @transform_6, window_bounds = array<i64: 32, 128>}, {pipeline_mode = #tpu.pipeline_mode<synchronous>, transform_indices = @transform_7, window_bounds = array<i64: 1, 128>}, {transform_indices = @transform_8, window_bounds = array<i64: 8, 16, 64>}, {pipeline_mode = #tpu.pipeline_mode<synchronous>, transform_indices = @transform_9, window_bounds = array<i64: 32, 64>}, {pipeline_mode = #tpu.pipeline_mode<synchronous>, transform_indices = @transform_10, window_bounds = array<i64: 32, 32>}, {transform_indices = @transform_11, window_bounds = array<i64: 8, 128>}, {transform_indices = @transform_12, window_bounds = array<i64: 8, 16>}, {transform_indices = @transform_13, window_bounds = array<i64: 8, 64>}, {transform_indices = @transform_14, window_bounds = array<i64: 8, 64>}]} {
    %c0 = arith.constant 0 : index
    %c0_0 = arith.constant 0 : index
    %c0_1 = arith.constant 0 : index
    %0 = vector.load %arg1[%c0, %c0_0, %c0_1] : memref<8x8x32xf32, #tpu.memory_space<vmem>>, vector<8x8x32xf32>
    %1 = vector.shape_cast %0 : vector<8x8x32xf32> to vector<64x32xf32>
    %c0_2 = arith.constant 0 : index
    %c0_3 = arith.constant 0 : index
    %2 = vector.load %arg2[%c0_2, %c0_3] : memref<32x128xf32, #tpu.memory_space<vmem>>, vector<32x128xf32>
    %cst = arith.constant dense<0.000000e+00> : vector<64x128xf32>
    %3 = tpu.matmul %1, %2, %cst {dimension_numbers = #tpu.dot_dimension_numbers<[1], [0], [0], [1], [0, 0, 1, 1], [], []>} : vector<64x32xf32>, vector<32x128xf32>, vector<64x128xf32> -> vector<64x128xf32>
    %c0_4 = arith.constant 0 : index
    %c0_5 = arith.constant 0 : index
    %4 = vector.load %arg4[%c0_4, %c0_5] : memref<1x128xf32, #tpu.memory_space<vmem>>, vector<1x128xf32>
    %5 = vector.broadcast %4 : vector<1x128xf32> to vector<64x128xf32>
    %6 = arith.addf %3, %5 : vector<64x128xf32>
    %7 = vector.shape_cast %6 : vector<64x128xf32> to vector<8x8x128xf32>
    %c0_6 = arith.constant 0 : index
    %c0_7 = arith.constant 0 : index
    %8 = vector.load %arg3[%c0_6, %c0_7] : memref<32x128xf32, #tpu.memory_space<vmem>>, vector<32x128xf32>
    %c0_8 = arith.constant 0 : index
    %c0_9 = arith.constant 0 : index
    %9 = vector.load %arg5[%c0_8, %c0_9] : memref<64x128xf32, #tpu.memory_space<vmem>>, vector<64x128xf32>
    %c0_10 = arith.constant 0 : index
    %c0_11 = arith.constant 0 : index
    %10 = vector.load %arg6[%c0_10, %c0_11] : memref<1x128xf32, #tpu.memory_space<vmem>>, vector<1x128xf32>
    %11 = vector.shape_cast %10 : vector<1x128xf32> to vector<1x128xf32>
    %12 = vector.broadcast %11 : vector<1x128xf32> to vector<8x128xf32>
    %cst_12 = arith.constant 0.000000e+00 : f32
    %13 = vector.broadcast %cst_12 : f32 to vector<8x32xf32>
    %14 = vector.extract_strided_slice %7 {offsets = [0, 0, 0], sizes = [1, 8, 128], strides = [1, 1, 1]} : vector<8x8x128xf32> to vector<1x8x128xf32>
    %15 = vector.shape_cast %14 : vector<1x8x128xf32> to vector<8x128xf32>
    %cst_13 = arith.constant dense<0.000000e+00> : vector<8x128xf32>
    %16 = tpu.matmul %13, %8, %cst_13 {dimension_numbers = #tpu.dot_dimension_numbers<[1], [0], [0], [1], [0, 0, 1, 1], [], []>} : vector<8x32xf32>, vector<32x128xf32>, vector<8x128xf32> -> vector<8x128xf32>
    %17 = arith.addf %15, %16 : vector<8x128xf32>
    %18 = vector.extract_strided_slice %17 {offsets = [0, 0], sizes = [8, 32], strides = [1, 1]} : vector<8x128xf32> to vector<8x32xf32>
    %19 = arith.negf %18 : vector<8x32xf32>
    %20 = math.exp %19 : vector<8x32xf32>
    %cst_14 = arith.constant 1.000000e+00 : f32
    %21 = vector.broadcast %cst_14 : f32 to vector<8x32xf32>
    %22 = arith.addf %21, %20 : vector<8x32xf32>
    %23 = arith.divf %21, %22 : vector<8x32xf32>
    %24 = vector.extract_strided_slice %17 {offsets = [0, 32], sizes = [8, 32], strides = [1, 1]} : vector<8x128xf32> to vector<8x32xf32>
    %25 = arith.negf %24 : vector<8x32xf32>
    %26 = math.exp %25 : vector<8x32xf32>
    %cst_15 = arith.constant 1.000000e+00 : f32
    %27 = vector.broadcast %cst_15 : f32 to vector<8x32xf32>
    %28 = arith.addf %27, %26 : vector<8x32xf32>
    %29 = arith.divf %27, %28 : vector<8x32xf32>
    %30 = vector.extract_strided_slice %17 {offsets = [0, 64], sizes = [8, 32], strides = [1, 1]} : vector<8x128xf32> to vector<8x32xf32>
    %31 = math.tanh %30 : vector<8x32xf32>
    %32 = vector.extract_strided_slice %17 {offsets = [0, 96], sizes = [8, 32], strides = [1, 1]} : vector<8x128xf32> to vector<8x32xf32>
    %33 = arith.negf %32 : vector<8x32xf32>
    %34 = math.exp %33 : vector<8x32xf32>
    %cst_16 = arith.constant 1.000000e+00 : f32
    %35 = vector.broadcast %cst_16 : f32 to vector<8x32xf32>
    %36 = arith.addf %35, %34 : vector<8x32xf32>
    %37 = arith.divf %35, %36 : vector<8x32xf32>
    %38 = arith.mulf %29, %13 : vector<8x32xf32>
    %39 = arith.mulf %23, %31 : vector<8x32xf32>
    %40 = arith.addf %38, %39 : vector<8x32xf32>
    %41 = math.tanh %40 : vector<8x32xf32>
    %42 = arith.mulf %37, %41 : vector<8x32xf32>
    %43 = vector.extract_strided_slice %7 {offsets = [1, 0, 0], sizes = [1, 8, 128], strides = [1, 1, 1]} : vector<8x8x128xf32> to vector<1x8x128xf32>
    %44 = vector.shape_cast %43 : vector<1x8x128xf32> to vector<8x128xf32>
    %cst_17 = arith.constant dense<0.000000e+00> : vector<8x128xf32>
    %45 = tpu.matmul %42, %8, %cst_17 {dimension_numbers = #tpu.dot_dimension_numbers<[1], [0], [0], [1], [0, 0, 1, 1], [], []>} : vector<8x32xf32>, vector<32x128xf32>, vector<8x128xf32> -> vector<8x128xf32>
    %46 = arith.addf %44, %45 : vector<8x128xf32>
    %47 = vector.extract_strided_slice %46 {offsets = [0, 0], sizes = [8, 32], strides = [1, 1]} : vector<8x128xf32> to vector<8x32xf32>
    %48 = arith.negf %47 : vector<8x32xf32>
    %49 = math.exp %48 : vector<8x32xf32>
    %cst_18 = arith.constant 1.000000e+00 : f32
    %50 = vector.broadcast %cst_18 : f32 to vector<8x32xf32>
    %51 = arith.addf %50, %49 : vector<8x32xf32>
    %52 = arith.divf %50, %51 : vector<8x32xf32>
    %53 = vector.extract_strided_slice %46 {offsets = [0, 32], sizes = [8, 32], strides = [1, 1]} : vector<8x128xf32> to vector<8x32xf32>
    %54 = arith.negf %53 : vector<8x32xf32>
    %55 = math.exp %54 : vector<8x32xf32>
    %cst_19 = arith.constant 1.000000e+00 : f32
    %56 = vector.broadcast %cst_19 : f32 to vector<8x32xf32>
    %57 = arith.addf %56, %55 : vector<8x32xf32>
    %58 = arith.divf %56, %57 : vector<8x32xf32>
    %59 = vector.extract_strided_slice %46 {offsets = [0, 64], sizes = [8, 32], strides = [1, 1]} : vector<8x128xf32> to vector<8x32xf32>
    %60 = math.tanh %59 : vector<8x32xf32>
    %61 = vector.extract_strided_slice %46 {offsets = [0, 96], sizes = [8, 32], strides = [1, 1]} : vector<8x128xf32> to vector<8x32xf32>
    %62 = arith.negf %61 : vector<8x32xf32>
    %63 = math.exp %62 : vector<8x32xf32>
    %cst_20 = arith.constant 1.000000e+00 : f32
    %64 = vector.broadcast %cst_20 : f32 to vector<8x32xf32>
    %65 = arith.addf %64, %63 : vector<8x32xf32>
    %66 = arith.divf %64, %65 : vector<8x32xf32>
    %67 = arith.mulf %58, %40 : vector<8x32xf32>
    %68 = arith.mulf %52, %60 : vector<8x32xf32>
    %69 = arith.addf %67, %68 : vector<8x32xf32>
    %70 = math.tanh %69 : vector<8x32xf32>
    %71 = arith.mulf %66, %70 : vector<8x32xf32>
    %72 = tpu.concatenate %42, %13 in 1 : vector<8x32xf32>, vector<8x32xf32> -> vector<8x64xf32>
    %cst_21 = arith.constant dense<0.000000e+00> : vector<8x128xf32>
    %73 = tpu.matmul %72, %9, %cst_21 {dimension_numbers = #tpu.dot_dimension_numbers<[1], [0], [0], [1], [0, 0, 1, 1], [], []>} : vector<8x64xf32>, vector<64x128xf32>, vector<8x128xf32> -> vector<8x128xf32>
    %74 = arith.addf %73, %12 : vector<8x128xf32>
    %75 = vector.extract_strided_slice %74 {offsets = [0, 0], sizes = [8, 32], strides = [1, 1]} : vector<8x128xf32> to vector<8x32xf32>
    %76 = arith.negf %75 : vector<8x32xf32>
    %77 = math.exp %76 : vector<8x32xf32>
    %cst_22 = arith.constant 1.000000e+00 : f32
    %78 = vector.broadcast %cst_22 : f32 to vector<8x32xf32>
    %79 = arith.addf %78, %77 : vector<8x32xf32>
    %80 = arith.divf %78, %79 : vector<8x32xf32>
    %81 = vector.extract_strided_slice %74 {offsets = [0, 32], sizes = [8, 32], strides = [1, 1]} : vector<8x128xf32> to vector<8x32xf32>
    %82 = arith.negf %81 : vector<8x32xf32>
    %83 = math.exp %82 : vector<8x32xf32>
    %cst_23 = arith.constant 1.000000e+00 : f32
    %84 = vector.broadcast %cst_23 : f32 to vector<8x32xf32>
    %85 = arith.addf %84, %83 : vector<8x32xf32>
    %86 = arith.divf %84, %85 : vector<8x32xf32>
    %87 = vector.extract_strided_slice %74 {offsets = [0, 64], sizes = [8, 32], strides = [1, 1]} : vector<8x128xf32> to vector<8x32xf32>
    %88 = math.tanh %87 : vector<8x32xf32>
    %89 = vector.extract_strided_slice %74 {offsets = [0, 96], sizes = [8, 32], strides = [1, 1]} : vector<8x128xf32> to vector<8x32xf32>
    %90 = arith.negf %89 : vector<8x32xf32>
    %91 = math.exp %90 : vector<8x32xf32>
    %cst_24 = arith.constant 1.000000e+00 : f32
    %92 = vector.broadcast %cst_24 : f32 to vector<8x32xf32>
    %93 = arith.addf %92, %91 : vector<8x32xf32>
    %94 = arith.divf %92, %93 : vector<8x32xf32>
    %95 = arith.mulf %86, %13 : vector<8x32xf32>
    %96 = arith.mulf %80, %88 : vector<8x32xf32>
    %97 = arith.addf %95, %96 : vector<8x32xf32>
    %98 = math.tanh %97 : vector<8x32xf32>
    %99 = arith.mulf %94, %98 : vector<8x32xf32>
    %100 = vector.extract_strided_slice %7 {offsets = [2, 0, 0], sizes = [1, 8, 128], strides = [1, 1, 1]} : vector<8x8x128xf32> to vector<1x8x128xf32>
    %101 = vector.shape_cast %100 : vector<1x8x128xf32> to vector<8x128xf32>
    %cst_25 = arith.constant dense<0.000000e+00> : vector<8x128xf32>
    %102 = tpu.matmul %71, %8, %cst_25 {dimension_numbers = #tpu.dot_dimension_numbers<[1], [0], [0], [1], [0, 0, 1, 1], [], []>} : vector<8x32xf32>, vector<32x128xf32>, vector<8x128xf32> -> vector<8x128xf32>
    %103 = arith.addf %101, %102 : vector<8x128xf32>
    %104 = vector.extract_strided_slice %103 {offsets = [0, 0], sizes = [8, 32], strides = [1, 1]} : vector<8x128xf32> to vector<8x32xf32>
    %105 = arith.negf %104 : vector<8x32xf32>
    %106 = math.exp %105 : vector<8x32xf32>
    %cst_26 = arith.constant 1.000000e+00 : f32
    %107 = vector.broadcast %cst_26 : f32 to vector<8x32xf32>
    %108 = arith.addf %107, %106 : vector<8x32xf32>
    %109 = arith.divf %107, %108 : vector<8x32xf32>
    %110 = vector.extract_strided_slice %103 {offsets = [0, 32], sizes = [8, 32], strides = [1, 1]} : vector<8x128xf32> to vector<8x32xf32>
    %111 = arith.negf %110 : vector<8x32xf32>
    %112 = math.exp %111 : vector<8x32xf32>
    %cst_27 = arith.constant 1.000000e+00 : f32
    %113 = vector.broadcast %cst_27 : f32 to vector<8x32xf32>
    %114 = arith.addf %113, %112 : vector<8x32xf32>
    %115 = arith.divf %113, %114 : vector<8x32xf32>
    %116 = vector.extract_strided_slice %103 {offsets = [0, 64], sizes = [8, 32], strides = [1, 1]} : vector<8x128xf32> to vector<8x32xf32>
    %117 = math.tanh %116 : vector<8x32xf32>
    %118 = vector.extract_strided_slice %103 {offsets = [0, 96], sizes = [8, 32], strides = [1, 1]} : vector<8x128xf32> to vector<8x32xf32>
    %119 = arith.negf %118 : vector<8x32xf32>
    %120 = math.exp %119 : vector<8x32xf32>
    %cst_28 = arith.constant 1.000000e+00 : f32
    %121 = vector.broadcast %cst_28 : f32 to vector<8x32xf32>
    %122 = arith.addf %121, %120 : vector<8x32xf32>
    %123 = arith.divf %121, %122 : vector<8x32xf32>
    %124 = arith.mulf %115, %69 : vector<8x32xf32>
    %125 = arith.mulf %109, %117 : vector<8x32xf32>
    %126 = arith.addf %124, %125 : vector<8x32xf32>
    %127 = math.tanh %126 : vector<8x32xf32>
    %128 = arith.mulf %123, %127 : vector<8x32xf32>
    %129 = tpu.concatenate %71, %99 in 1 : vector<8x32xf32>, vector<8x32xf32> -> vector<8x64xf32>
    %cst_29 = arith.constant dense<0.000000e+00> : vector<8x128xf32>
    %130 = tpu.matmul %129, %9, %cst_29 {dimension_numbers = #tpu.dot_dimension_numbers<[1], [0], [0], [1], [0, 0, 1, 1], [], []>} : vector<8x64xf32>, vector<64x128xf32>, vector<8x128xf32> -> vector<8x128xf32>
    %131 = arith.addf %130, %12 : vector<8x128xf32>
    %132 = vector.extract_strided_slice %131 {offsets = [0, 0], sizes = [8, 32], strides = [1, 1]} : vector<8x128xf32> to vector<8x32xf32>
    %133 = arith.negf %132 : vector<8x32xf32>
    %134 = math.exp %133 : vector<8x32xf32>
    %cst_30 = arith.constant 1.000000e+00 : f32
    %135 = vector.broadcast %cst_30 : f32 to vector<8x32xf32>
    %136 = arith.addf %135, %134 : vector<8x32xf32>
    %137 = arith.divf %135, %136 : vector<8x32xf32>
    %138 = vector.extract_strided_slice %131 {offsets = [0, 32], sizes = [8, 32], strides = [1, 1]} : vector<8x128xf32> to vector<8x32xf32>
    %139 = arith.negf %138 : vector<8x32xf32>
    %140 = math.exp %139 : vector<8x32xf32>
    %cst_31 = arith.constant 1.000000e+00 : f32
    %141 = vector.broadcast %cst_31 : f32 to vector<8x32xf32>
    %142 = arith.addf %141, %140 : vector<8x32xf32>
    %143 = arith.divf %141, %142 : vector<8x32xf32>
    %144 = vector.extract_strided_slice %131 {offsets = [0, 64], sizes = [8, 32], strides = [1, 1]} : vector<8x128xf32> to vector<8x32xf32>
    %145 = math.tanh %144 : vector<8x32xf32>
    %146 = vector.extract_strided_slice %131 {offsets = [0, 96], sizes = [8, 32], strides = [1, 1]} : vector<8x128xf32> to vector<8x32xf32>
    %147 = arith.negf %146 : vector<8x32xf32>
    %148 = math.exp %147 : vector<8x32xf32>
    %cst_32 = arith.constant 1.000000e+00 : f32
    %149 = vector.broadcast %cst_32 : f32 to vector<8x32xf32>
    %150 = arith.addf %149, %148 : vector<8x32xf32>
    %151 = arith.divf %149, %150 : vector<8x32xf32>
    %152 = arith.mulf %143, %97 : vector<8x32xf32>
    %153 = arith.mulf %137, %145 : vector<8x32xf32>
    %154 = arith.addf %152, %153 : vector<8x32xf32>
    %155 = math.tanh %154 : vector<8x32xf32>
    %156 = arith.mulf %151, %155 : vector<8x32xf32>
    %157 = vector.extract_strided_slice %7 {offsets = [3, 0, 0], sizes = [1, 8, 128], strides = [1, 1, 1]} : vector<8x8x128xf32> to vector<1x8x128xf32>
    %158 = vector.shape_cast %157 : vector<1x8x128xf32> to vector<8x128xf32>
    %cst_33 = arith.constant dense<0.000000e+00> : vector<8x128xf32>
    %159 = tpu.matmul %128, %8, %cst_33 {dimension_numbers = #tpu.dot_dimension_numbers<[1], [0], [0], [1], [0, 0, 1, 1], [], []>} : vector<8x32xf32>, vector<32x128xf32>, vector<8x128xf32> -> vector<8x128xf32>
    %160 = arith.addf %158, %159 : vector<8x128xf32>
    %161 = vector.extract_strided_slice %160 {offsets = [0, 0], sizes = [8, 32], strides = [1, 1]} : vector<8x128xf32> to vector<8x32xf32>
    %162 = arith.negf %161 : vector<8x32xf32>
    %163 = math.exp %162 : vector<8x32xf32>
    %cst_34 = arith.constant 1.000000e+00 : f32
    %164 = vector.broadcast %cst_34 : f32 to vector<8x32xf32>
    %165 = arith.addf %164, %163 : vector<8x32xf32>
    %166 = arith.divf %164, %165 : vector<8x32xf32>
    %167 = vector.extract_strided_slice %160 {offsets = [0, 32], sizes = [8, 32], strides = [1, 1]} : vector<8x128xf32> to vector<8x32xf32>
    %168 = arith.negf %167 : vector<8x32xf32>
    %169 = math.exp %168 : vector<8x32xf32>
    %cst_35 = arith.constant 1.000000e+00 : f32
    %170 = vector.broadcast %cst_35 : f32 to vector<8x32xf32>
    %171 = arith.addf %170, %169 : vector<8x32xf32>
    %172 = arith.divf %170, %171 : vector<8x32xf32>
    %173 = vector.extract_strided_slice %160 {offsets = [0, 64], sizes = [8, 32], strides = [1, 1]} : vector<8x128xf32> to vector<8x32xf32>
    %174 = math.tanh %173 : vector<8x32xf32>
    %175 = vector.extract_strided_slice %160 {offsets = [0, 96], sizes = [8, 32], strides = [1, 1]} : vector<8x128xf32> to vector<8x32xf32>
    %176 = arith.negf %175 : vector<8x32xf32>
    %177 = math.exp %176 : vector<8x32xf32>
    %cst_36 = arith.constant 1.000000e+00 : f32
    %178 = vector.broadcast %cst_36 : f32 to vector<8x32xf32>
    %179 = arith.addf %178, %177 : vector<8x32xf32>
    %180 = arith.divf %178, %179 : vector<8x32xf32>
    %181 = arith.mulf %172, %126 : vector<8x32xf32>
    %182 = arith.mulf %166, %174 : vector<8x32xf32>
    %183 = arith.addf %181, %182 : vector<8x32xf32>
    %184 = math.tanh %183 : vector<8x32xf32>
    %185 = arith.mulf %180, %184 : vector<8x32xf32>
    %186 = tpu.concatenate %128, %156 in 1 : vector<8x32xf32>, vector<8x32xf32> -> vector<8x64xf32>
    %cst_37 = arith.constant dense<0.000000e+00> : vector<8x128xf32>
    %187 = tpu.matmul %186, %9, %cst_37 {dimension_numbers = #tpu.dot_dimension_numbers<[1], [0], [0], [1], [0, 0, 1, 1], [], []>} : vector<8x64xf32>, vector<64x128xf32>, vector<8x128xf32> -> vector<8x128xf32>
    %188 = arith.addf %187, %12 : vector<8x128xf32>
    %189 = vector.extract_strided_slice %188 {offsets = [0, 0], sizes = [8, 32], strides = [1, 1]} : vector<8x128xf32> to vector<8x32xf32>
    %190 = arith.negf %189 : vector<8x32xf32>
    %191 = math.exp %190 : vector<8x32xf32>
    %cst_38 = arith.constant 1.000000e+00 : f32
    %192 = vector.broadcast %cst_38 : f32 to vector<8x32xf32>
    %193 = arith.addf %192, %191 : vector<8x32xf32>
    %194 = arith.divf %192, %193 : vector<8x32xf32>
    %195 = vector.extract_strided_slice %188 {offsets = [0, 32], sizes = [8, 32], strides = [1, 1]} : vector<8x128xf32> to vector<8x32xf32>
    %196 = arith.negf %195 : vector<8x32xf32>
    %197 = math.exp %196 : vector<8x32xf32>
    %cst_39 = arith.constant 1.000000e+00 : f32
    %198 = vector.broadcast %cst_39 : f32 to vector<8x32xf32>
    %199 = arith.addf %198, %197 : vector<8x32xf32>
    %200 = arith.divf %198, %199 : vector<8x32xf32>
    %201 = vector.extract_strided_slice %188 {offsets = [0, 64], sizes = [8, 32], strides = [1, 1]} : vector<8x128xf32> to vector<8x32xf32>
    %202 = math.tanh %201 : vector<8x32xf32>
    %203 = vector.extract_strided_slice %188 {offsets = [0, 96], sizes = [8, 32], strides = [1, 1]} : vector<8x128xf32> to vector<8x32xf32>
    %204 = arith.negf %203 : vector<8x32xf32>
    %205 = math.exp %204 : vector<8x32xf32>
    %cst_40 = arith.constant 1.000000e+00 : f32
    %206 = vector.broadcast %cst_40 : f32 to vector<8x32xf32>
    %207 = arith.addf %206, %205 : vector<8x32xf32>
    %208 = arith.divf %206, %207 : vector<8x32xf32>
    %209 = arith.mulf %200, %154 : vector<8x32xf32>
    %210 = arith.mulf %194, %202 : vector<8x32xf32>
    %211 = arith.addf %209, %210 : vector<8x32xf32>
    %212 = math.tanh %211 : vector<8x32xf32>
    %213 = arith.mulf %208, %212 : vector<8x32xf32>
    %214 = vector.extract_strided_slice %7 {offsets = [4, 0, 0], sizes = [1, 8, 128], strides = [1, 1, 1]} : vector<8x8x128xf32> to vector<1x8x128xf32>
    %215 = vector.shape_cast %214 : vector<1x8x128xf32> to vector<8x128xf32>
    %cst_41 = arith.constant dense<0.000000e+00> : vector<8x128xf32>
    %216 = tpu.matmul %185, %8, %cst_41 {dimension_numbers = #tpu.dot_dimension_numbers<[1], [0], [0], [1], [0, 0, 1, 1], [], []>} : vector<8x32xf32>, vector<32x128xf32>, vector<8x128xf32> -> vector<8x128xf32>
    %217 = arith.addf %215, %216 : vector<8x128xf32>
    %218 = vector.extract_strided_slice %217 {offsets = [0, 0], sizes = [8, 32], strides = [1, 1]} : vector<8x128xf32> to vector<8x32xf32>
    %219 = arith.negf %218 : vector<8x32xf32>
    %220 = math.exp %219 : vector<8x32xf32>
    %cst_42 = arith.constant 1.000000e+00 : f32
    %221 = vector.broadcast %cst_42 : f32 to vector<8x32xf32>
    %222 = arith.addf %221, %220 : vector<8x32xf32>
    %223 = arith.divf %221, %222 : vector<8x32xf32>
    %224 = vector.extract_strided_slice %217 {offsets = [0, 32], sizes = [8, 32], strides = [1, 1]} : vector<8x128xf32> to vector<8x32xf32>
    %225 = arith.negf %224 : vector<8x32xf32>
    %226 = math.exp %225 : vector<8x32xf32>
    %cst_43 = arith.constant 1.000000e+00 : f32
    %227 = vector.broadcast %cst_43 : f32 to vector<8x32xf32>
    %228 = arith.addf %227, %226 : vector<8x32xf32>
    %229 = arith.divf %227, %228 : vector<8x32xf32>
    %230 = vector.extract_strided_slice %217 {offsets = [0, 64], sizes = [8, 32], strides = [1, 1]} : vector<8x128xf32> to vector<8x32xf32>
    %231 = math.tanh %230 : vector<8x32xf32>
    %232 = vector.extract_strided_slice %217 {offsets = [0, 96], sizes = [8, 32], strides = [1, 1]} : vector<8x128xf32> to vector<8x32xf32>
    %233 = arith.negf %232 : vector<8x32xf32>
    %234 = math.exp %233 : vector<8x32xf32>
    %cst_44 = arith.constant 1.000000e+00 : f32
    %235 = vector.broadcast %cst_44 : f32 to vector<8x32xf32>
    %236 = arith.addf %235, %234 : vector<8x32xf32>
    %237 = arith.divf %235, %236 : vector<8x32xf32>
    %238 = arith.mulf %229, %183 : vector<8x32xf32>
    %239 = arith.mulf %223, %231 : vector<8x32xf32>
    %240 = arith.addf %238, %239 : vector<8x32xf32>
    %241 = math.tanh %240 : vector<8x32xf32>
    %242 = arith.mulf %237, %241 : vector<8x32xf32>
    %243 = tpu.concatenate %185, %213 in 1 : vector<8x32xf32>, vector<8x32xf32> -> vector<8x64xf32>
    %cst_45 = arith.constant dense<0.000000e+00> : vector<8x128xf32>
    %244 = tpu.matmul %243, %9, %cst_45 {dimension_numbers = #tpu.dot_dimension_numbers<[1], [0], [0], [1], [0, 0, 1, 1], [], []>} : vector<8x64xf32>, vector<64x128xf32>, vector<8x128xf32> -> vector<8x128xf32>
    %245 = arith.addf %244, %12 : vector<8x128xf32>
    %246 = vector.extract_strided_slice %245 {offsets = [0, 0], sizes = [8, 32], strides = [1, 1]} : vector<8x128xf32> to vector<8x32xf32>
    %247 = arith.negf %246 : vector<8x32xf32>
    %248 = math.exp %247 : vector<8x32xf32>
    %cst_46 = arith.constant 1.000000e+00 : f32
    %249 = vector.broadcast %cst_46 : f32 to vector<8x32xf32>
    %250 = arith.addf %249, %248 : vector<8x32xf32>
    %251 = arith.divf %249, %250 : vector<8x32xf32>
    %252 = vector.extract_strided_slice %245 {offsets = [0, 32], sizes = [8, 32], strides = [1, 1]} : vector<8x128xf32> to vector<8x32xf32>
    %253 = arith.negf %252 : vector<8x32xf32>
    %254 = math.exp %253 : vector<8x32xf32>
    %cst_47 = arith.constant 1.000000e+00 : f32
    %255 = vector.broadcast %cst_47 : f32 to vector<8x32xf32>
    %256 = arith.addf %255, %254 : vector<8x32xf32>
    %257 = arith.divf %255, %256 : vector<8x32xf32>
    %258 = vector.extract_strided_slice %245 {offsets = [0, 64], sizes = [8, 32], strides = [1, 1]} : vector<8x128xf32> to vector<8x32xf32>
    %259 = math.tanh %258 : vector<8x32xf32>
    %260 = vector.extract_strided_slice %245 {offsets = [0, 96], sizes = [8, 32], strides = [1, 1]} : vector<8x128xf32> to vector<8x32xf32>
    %261 = arith.negf %260 : vector<8x32xf32>
    %262 = math.exp %261 : vector<8x32xf32>
    %cst_48 = arith.constant 1.000000e+00 : f32
    %263 = vector.broadcast %cst_48 : f32 to vector<8x32xf32>
    %264 = arith.addf %263, %262 : vector<8x32xf32>
    %265 = arith.divf %263, %264 : vector<8x32xf32>
    %266 = arith.mulf %257, %211 : vector<8x32xf32>
    %267 = arith.mulf %251, %259 : vector<8x32xf32>
    %268 = arith.addf %266, %267 : vector<8x32xf32>
    %269 = math.tanh %268 : vector<8x32xf32>
    %270 = arith.mulf %265, %269 : vector<8x32xf32>
    %271 = vector.extract_strided_slice %7 {offsets = [5, 0, 0], sizes = [1, 8, 128], strides = [1, 1, 1]} : vector<8x8x128xf32> to vector<1x8x128xf32>
    %272 = vector.shape_cast %271 : vector<1x8x128xf32> to vector<8x128xf32>
    %cst_49 = arith.constant dense<0.000000e+00> : vector<8x128xf32>
    %273 = tpu.matmul %242, %8, %cst_49 {dimension_numbers = #tpu.dot_dimension_numbers<[1], [0], [0], [1], [0, 0, 1, 1], [], []>} : vector<8x32xf32>, vector<32x128xf32>, vector<8x128xf32> -> vector<8x128xf32>
    %274 = arith.addf %272, %273 : vector<8x128xf32>
    %275 = vector.extract_strided_slice %274 {offsets = [0, 0], sizes = [8, 32], strides = [1, 1]} : vector<8x128xf32> to vector<8x32xf32>
    %276 = arith.negf %275 : vector<8x32xf32>
    %277 = math.exp %276 : vector<8x32xf32>
    %cst_50 = arith.constant 1.000000e+00 : f32
    %278 = vector.broadcast %cst_50 : f32 to vector<8x32xf32>
    %279 = arith.addf %278, %277 : vector<8x32xf32>
    %280 = arith.divf %278, %279 : vector<8x32xf32>
    %281 = vector.extract_strided_slice %274 {offsets = [0, 32], sizes = [8, 32], strides = [1, 1]} : vector<8x128xf32> to vector<8x32xf32>
    %282 = arith.negf %281 : vector<8x32xf32>
    %283 = math.exp %282 : vector<8x32xf32>
    %cst_51 = arith.constant 1.000000e+00 : f32
    %284 = vector.broadcast %cst_51 : f32 to vector<8x32xf32>
    %285 = arith.addf %284, %283 : vector<8x32xf32>
    %286 = arith.divf %284, %285 : vector<8x32xf32>
    %287 = vector.extract_strided_slice %274 {offsets = [0, 64], sizes = [8, 32], strides = [1, 1]} : vector<8x128xf32> to vector<8x32xf32>
    %288 = math.tanh %287 : vector<8x32xf32>
    %289 = vector.extract_strided_slice %274 {offsets = [0, 96], sizes = [8, 32], strides = [1, 1]} : vector<8x128xf32> to vector<8x32xf32>
    %290 = arith.negf %289 : vector<8x32xf32>
    %291 = math.exp %290 : vector<8x32xf32>
    %cst_52 = arith.constant 1.000000e+00 : f32
    %292 = vector.broadcast %cst_52 : f32 to vector<8x32xf32>
    %293 = arith.addf %292, %291 : vector<8x32xf32>
    %294 = arith.divf %292, %293 : vector<8x32xf32>
    %295 = arith.mulf %286, %240 : vector<8x32xf32>
    %296 = arith.mulf %280, %288 : vector<8x32xf32>
    %297 = arith.addf %295, %296 : vector<8x32xf32>
    %298 = math.tanh %297 : vector<8x32xf32>
    %299 = arith.mulf %294, %298 : vector<8x32xf32>
    %300 = tpu.concatenate %242, %270 in 1 : vector<8x32xf32>, vector<8x32xf32> -> vector<8x64xf32>
    %cst_53 = arith.constant dense<0.000000e+00> : vector<8x128xf32>
    %301 = tpu.matmul %300, %9, %cst_53 {dimension_numbers = #tpu.dot_dimension_numbers<[1], [0], [0], [1], [0, 0, 1, 1], [], []>} : vector<8x64xf32>, vector<64x128xf32>, vector<8x128xf32> -> vector<8x128xf32>
    %302 = arith.addf %301, %12 : vector<8x128xf32>
    %303 = vector.extract_strided_slice %302 {offsets = [0, 0], sizes = [8, 32], strides = [1, 1]} : vector<8x128xf32> to vector<8x32xf32>
    %304 = arith.negf %303 : vector<8x32xf32>
    %305 = math.exp %304 : vector<8x32xf32>
    %cst_54 = arith.constant 1.000000e+00 : f32
    %306 = vector.broadcast %cst_54 : f32 to vector<8x32xf32>
    %307 = arith.addf %306, %305 : vector<8x32xf32>
    %308 = arith.divf %306, %307 : vector<8x32xf32>
    %309 = vector.extract_strided_slice %302 {offsets = [0, 32], sizes = [8, 32], strides = [1, 1]} : vector<8x128xf32> to vector<8x32xf32>
    %310 = arith.negf %309 : vector<8x32xf32>
    %311 = math.exp %310 : vector<8x32xf32>
    %cst_55 = arith.constant 1.000000e+00 : f32
    %312 = vector.broadcast %cst_55 : f32 to vector<8x32xf32>
    %313 = arith.addf %312, %311 : vector<8x32xf32>
    %314 = arith.divf %312, %313 : vector<8x32xf32>
    %315 = vector.extract_strided_slice %302 {offsets = [0, 64], sizes = [8, 32], strides = [1, 1]} : vector<8x128xf32> to vector<8x32xf32>
    %316 = math.tanh %315 : vector<8x32xf32>
    %317 = vector.extract_strided_slice %302 {offsets = [0, 96], sizes = [8, 32], strides = [1, 1]} : vector<8x128xf32> to vector<8x32xf32>
    %318 = arith.negf %317 : vector<8x32xf32>
    %319 = math.exp %318 : vector<8x32xf32>
    %cst_56 = arith.constant 1.000000e+00 : f32
    %320 = vector.broadcast %cst_56 : f32 to vector<8x32xf32>
    %321 = arith.addf %320, %319 : vector<8x32xf32>
    %322 = arith.divf %320, %321 : vector<8x32xf32>
    %323 = arith.mulf %314, %268 : vector<8x32xf32>
    %324 = arith.mulf %308, %316 : vector<8x32xf32>
    %325 = arith.addf %323, %324 : vector<8x32xf32>
    %326 = math.tanh %325 : vector<8x32xf32>
    %327 = arith.mulf %322, %326 : vector<8x32xf32>
    %328 = vector.extract_strided_slice %7 {offsets = [6, 0, 0], sizes = [1, 8, 128], strides = [1, 1, 1]} : vector<8x8x128xf32> to vector<1x8x128xf32>
    %329 = vector.shape_cast %328 : vector<1x8x128xf32> to vector<8x128xf32>
    %cst_57 = arith.constant dense<0.000000e+00> : vector<8x128xf32>
    %330 = tpu.matmul %299, %8, %cst_57 {dimension_numbers = #tpu.dot_dimension_numbers<[1], [0], [0], [1], [0, 0, 1, 1], [], []>} : vector<8x32xf32>, vector<32x128xf32>, vector<8x128xf32> -> vector<8x128xf32>
    %331 = arith.addf %329, %330 : vector<8x128xf32>
    %332 = vector.extract_strided_slice %331 {offsets = [0, 0], sizes = [8, 32], strides = [1, 1]} : vector<8x128xf32> to vector<8x32xf32>
    %333 = arith.negf %332 : vector<8x32xf32>
    %334 = math.exp %333 : vector<8x32xf32>
    %cst_58 = arith.constant 1.000000e+00 : f32
    %335 = vector.broadcast %cst_58 : f32 to vector<8x32xf32>
    %336 = arith.addf %335, %334 : vector<8x32xf32>
    %337 = arith.divf %335, %336 : vector<8x32xf32>
    %338 = vector.extract_strided_slice %331 {offsets = [0, 32], sizes = [8, 32], strides = [1, 1]} : vector<8x128xf32> to vector<8x32xf32>
    %339 = arith.negf %338 : vector<8x32xf32>
    %340 = math.exp %339 : vector<8x32xf32>
    %cst_59 = arith.constant 1.000000e+00 : f32
    %341 = vector.broadcast %cst_59 : f32 to vector<8x32xf32>
    %342 = arith.addf %341, %340 : vector<8x32xf32>
    %343 = arith.divf %341, %342 : vector<8x32xf32>
    %344 = vector.extract_strided_slice %331 {offsets = [0, 64], sizes = [8, 32], strides = [1, 1]} : vector<8x128xf32> to vector<8x32xf32>
    %345 = math.tanh %344 : vector<8x32xf32>
    %346 = vector.extract_strided_slice %331 {offsets = [0, 96], sizes = [8, 32], strides = [1, 1]} : vector<8x128xf32> to vector<8x32xf32>
    %347 = arith.negf %346 : vector<8x32xf32>
    %348 = math.exp %347 : vector<8x32xf32>
    %cst_60 = arith.constant 1.000000e+00 : f32
    %349 = vector.broadcast %cst_60 : f32 to vector<8x32xf32>
    %350 = arith.addf %349, %348 : vector<8x32xf32>
    %351 = arith.divf %349, %350 : vector<8x32xf32>
    %352 = arith.mulf %343, %297 : vector<8x32xf32>
    %353 = arith.mulf %337, %345 : vector<8x32xf32>
    %354 = arith.addf %352, %353 : vector<8x32xf32>
    %355 = math.tanh %354 : vector<8x32xf32>
    %356 = arith.mulf %351, %355 : vector<8x32xf32>
    %357 = tpu.concatenate %299, %327 in 1 : vector<8x32xf32>, vector<8x32xf32> -> vector<8x64xf32>
    %cst_61 = arith.constant dense<0.000000e+00> : vector<8x128xf32>
    %358 = tpu.matmul %357, %9, %cst_61 {dimension_numbers = #tpu.dot_dimension_numbers<[1], [0], [0], [1], [0, 0, 1, 1], [], []>} : vector<8x64xf32>, vector<64x128xf32>, vector<8x128xf32> -> vector<8x128xf32>
    %359 = arith.addf %358, %12 : vector<8x128xf32>
    %360 = vector.extract_strided_slice %359 {offsets = [0, 0], sizes = [8, 32], strides = [1, 1]} : vector<8x128xf32> to vector<8x32xf32>
    %361 = arith.negf %360 : vector<8x32xf32>
    %362 = math.exp %361 : vector<8x32xf32>
    %cst_62 = arith.constant 1.000000e+00 : f32
    %363 = vector.broadcast %cst_62 : f32 to vector<8x32xf32>
    %364 = arith.addf %363, %362 : vector<8x32xf32>
    %365 = arith.divf %363, %364 : vector<8x32xf32>
    %366 = vector.extract_strided_slice %359 {offsets = [0, 32], sizes = [8, 32], strides = [1, 1]} : vector<8x128xf32> to vector<8x32xf32>
    %367 = arith.negf %366 : vector<8x32xf32>
    %368 = math.exp %367 : vector<8x32xf32>
    %cst_63 = arith.constant 1.000000e+00 : f32
    %369 = vector.broadcast %cst_63 : f32 to vector<8x32xf32>
    %370 = arith.addf %369, %368 : vector<8x32xf32>
    %371 = arith.divf %369, %370 : vector<8x32xf32>
    %372 = vector.extract_strided_slice %359 {offsets = [0, 64], sizes = [8, 32], strides = [1, 1]} : vector<8x128xf32> to vector<8x32xf32>
    %373 = math.tanh %372 : vector<8x32xf32>
    %374 = vector.extract_strided_slice %359 {offsets = [0, 96], sizes = [8, 32], strides = [1, 1]} : vector<8x128xf32> to vector<8x32xf32>
    %375 = arith.negf %374 : vector<8x32xf32>
    %376 = math.exp %375 : vector<8x32xf32>
    %cst_64 = arith.constant 1.000000e+00 : f32
    %377 = vector.broadcast %cst_64 : f32 to vector<8x32xf32>
    %378 = arith.addf %377, %376 : vector<8x32xf32>
    %379 = arith.divf %377, %378 : vector<8x32xf32>
    %380 = arith.mulf %371, %325 : vector<8x32xf32>
    %381 = arith.mulf %365, %373 : vector<8x32xf32>
    %382 = arith.addf %380, %381 : vector<8x32xf32>
    %383 = math.tanh %382 : vector<8x32xf32>
    %384 = arith.mulf %379, %383 : vector<8x32xf32>
    %385 = vector.extract_strided_slice %7 {offsets = [7, 0, 0], sizes = [1, 8, 128], strides = [1, 1, 1]} : vector<8x8x128xf32> to vector<1x8x128xf32>
    %386 = vector.shape_cast %385 : vector<1x8x128xf32> to vector<8x128xf32>
    %cst_65 = arith.constant dense<0.000000e+00> : vector<8x128xf32>
    %387 = tpu.matmul %356, %8, %cst_65 {dimension_numbers = #tpu.dot_dimension_numbers<[1], [0], [0], [1], [0, 0, 1, 1], [], []>} : vector<8x32xf32>, vector<32x128xf32>, vector<8x128xf32> -> vector<8x128xf32>
    %388 = arith.addf %386, %387 : vector<8x128xf32>
    %389 = vector.extract_strided_slice %388 {offsets = [0, 0], sizes = [8, 32], strides = [1, 1]} : vector<8x128xf32> to vector<8x32xf32>
    %390 = arith.negf %389 : vector<8x32xf32>
    %391 = math.exp %390 : vector<8x32xf32>
    %cst_66 = arith.constant 1.000000e+00 : f32
    %392 = vector.broadcast %cst_66 : f32 to vector<8x32xf32>
    %393 = arith.addf %392, %391 : vector<8x32xf32>
    %394 = arith.divf %392, %393 : vector<8x32xf32>
    %395 = vector.extract_strided_slice %388 {offsets = [0, 32], sizes = [8, 32], strides = [1, 1]} : vector<8x128xf32> to vector<8x32xf32>
    %396 = arith.negf %395 : vector<8x32xf32>
    %397 = math.exp %396 : vector<8x32xf32>
    %cst_67 = arith.constant 1.000000e+00 : f32
    %398 = vector.broadcast %cst_67 : f32 to vector<8x32xf32>
    %399 = arith.addf %398, %397 : vector<8x32xf32>
    %400 = arith.divf %398, %399 : vector<8x32xf32>
    %401 = vector.extract_strided_slice %388 {offsets = [0, 64], sizes = [8, 32], strides = [1, 1]} : vector<8x128xf32> to vector<8x32xf32>
    %402 = math.tanh %401 : vector<8x32xf32>
    %403 = vector.extract_strided_slice %388 {offsets = [0, 96], sizes = [8, 32], strides = [1, 1]} : vector<8x128xf32> to vector<8x32xf32>
    %404 = arith.negf %403 : vector<8x32xf32>
    %405 = math.exp %404 : vector<8x32xf32>
    %cst_68 = arith.constant 1.000000e+00 : f32
    %406 = vector.broadcast %cst_68 : f32 to vector<8x32xf32>
    %407 = arith.addf %406, %405 : vector<8x32xf32>
    %408 = arith.divf %406, %407 : vector<8x32xf32>
    %409 = arith.mulf %400, %354 : vector<8x32xf32>
    %410 = arith.mulf %394, %402 : vector<8x32xf32>
    %411 = arith.addf %409, %410 : vector<8x32xf32>
    %412 = math.tanh %411 : vector<8x32xf32>
    %413 = arith.mulf %408, %412 : vector<8x32xf32>
    %414 = tpu.concatenate %356, %384 in 1 : vector<8x32xf32>, vector<8x32xf32> -> vector<8x64xf32>
    %cst_69 = arith.constant dense<0.000000e+00> : vector<8x128xf32>
    %415 = tpu.matmul %414, %9, %cst_69 {dimension_numbers = #tpu.dot_dimension_numbers<[1], [0], [0], [1], [0, 0, 1, 1], [], []>} : vector<8x64xf32>, vector<64x128xf32>, vector<8x128xf32> -> vector<8x128xf32>
    %416 = arith.addf %415, %12 : vector<8x128xf32>
    %417 = vector.extract_strided_slice %416 {offsets = [0, 0], sizes = [8, 32], strides = [1, 1]} : vector<8x128xf32> to vector<8x32xf32>
    %418 = arith.negf %417 : vector<8x32xf32>
    %419 = math.exp %418 : vector<8x32xf32>
    %cst_70 = arith.constant 1.000000e+00 : f32
    %420 = vector.broadcast %cst_70 : f32 to vector<8x32xf32>
    %421 = arith.addf %420, %419 : vector<8x32xf32>
    %422 = arith.divf %420, %421 : vector<8x32xf32>
    %423 = vector.extract_strided_slice %416 {offsets = [0, 32], sizes = [8, 32], strides = [1, 1]} : vector<8x128xf32> to vector<8x32xf32>
    %424 = arith.negf %423 : vector<8x32xf32>
    %425 = math.exp %424 : vector<8x32xf32>
    %cst_71 = arith.constant 1.000000e+00 : f32
    %426 = vector.broadcast %cst_71 : f32 to vector<8x32xf32>
    %427 = arith.addf %426, %425 : vector<8x32xf32>
    %428 = arith.divf %426, %427 : vector<8x32xf32>
    %429 = vector.extract_strided_slice %416 {offsets = [0, 64], sizes = [8, 32], strides = [1, 1]} : vector<8x128xf32> to vector<8x32xf32>
    %430 = math.tanh %429 : vector<8x32xf32>
    %431 = vector.extract_strided_slice %416 {offsets = [0, 96], sizes = [8, 32], strides = [1, 1]} : vector<8x128xf32> to vector<8x32xf32>
    %432 = arith.negf %431 : vector<8x32xf32>
    %433 = math.exp %432 : vector<8x32xf32>
    %cst_72 = arith.constant 1.000000e+00 : f32
    %434 = vector.broadcast %cst_72 : f32 to vector<8x32xf32>
    %435 = arith.addf %434, %433 : vector<8x32xf32>
    %436 = arith.divf %434, %435 : vector<8x32xf32>
    %437 = arith.mulf %428, %382 : vector<8x32xf32>
    %438 = arith.mulf %422, %430 : vector<8x32xf32>
    %439 = arith.addf %437, %438 : vector<8x32xf32>
    %440 = math.tanh %439 : vector<8x32xf32>
    %441 = arith.mulf %436, %440 : vector<8x32xf32>
    %442 = tpu.concatenate %413, %441 in 1 : vector<8x32xf32>, vector<8x32xf32> -> vector<8x64xf32>
    %cst_73 = arith.constant dense<0.000000e+00> : vector<8x128xf32>
    %443 = tpu.matmul %442, %9, %cst_73 {dimension_numbers = #tpu.dot_dimension_numbers<[1], [0], [0], [1], [0, 0, 1, 1], [], []>} : vector<8x64xf32>, vector<64x128xf32>, vector<8x128xf32> -> vector<8x128xf32>
    %444 = arith.addf %443, %12 : vector<8x128xf32>
    %445 = vector.extract_strided_slice %444 {offsets = [0, 0], sizes = [8, 32], strides = [1, 1]} : vector<8x128xf32> to vector<8x32xf32>
    %446 = arith.negf %445 : vector<8x32xf32>
    %447 = math.exp %446 : vector<8x32xf32>
    %cst_74 = arith.constant 1.000000e+00 : f32
    %448 = vector.broadcast %cst_74 : f32 to vector<8x32xf32>
    %449 = arith.addf %448, %447 : vector<8x32xf32>
    %450 = arith.divf %448, %449 : vector<8x32xf32>
    %451 = vector.extract_strided_slice %444 {offsets = [0, 32], sizes = [8, 32], strides = [1, 1]} : vector<8x128xf32> to vector<8x32xf32>
    %452 = arith.negf %451 : vector<8x32xf32>
    %453 = math.exp %452 : vector<8x32xf32>
    %cst_75 = arith.constant 1.000000e+00 : f32
    %454 = vector.broadcast %cst_75 : f32 to vector<8x32xf32>
    %455 = arith.addf %454, %453 : vector<8x32xf32>
    %456 = arith.divf %454, %455 : vector<8x32xf32>
    %457 = vector.extract_strided_slice %444 {offsets = [0, 64], sizes = [8, 32], strides = [1, 1]} : vector<8x128xf32> to vector<8x32xf32>
    %458 = math.tanh %457 : vector<8x32xf32>
    %459 = vector.extract_strided_slice %444 {offsets = [0, 96], sizes = [8, 32], strides = [1, 1]} : vector<8x128xf32> to vector<8x32xf32>
    %460 = arith.negf %459 : vector<8x32xf32>
    %461 = math.exp %460 : vector<8x32xf32>
    %cst_76 = arith.constant 1.000000e+00 : f32
    %462 = vector.broadcast %cst_76 : f32 to vector<8x32xf32>
    %463 = arith.addf %462, %461 : vector<8x32xf32>
    %464 = arith.divf %462, %463 : vector<8x32xf32>
    %465 = arith.mulf %456, %439 : vector<8x32xf32>
    %466 = arith.mulf %450, %458 : vector<8x32xf32>
    %467 = arith.addf %465, %466 : vector<8x32xf32>
    %468 = math.tanh %467 : vector<8x32xf32>
    %469 = arith.mulf %464, %468 : vector<8x32xf32>
    %c0_77 = arith.constant 0 : index
    %c0_78 = arith.constant 0 : index
    %470 = vector.load %arg7[%c0_77, %c0_78] : memref<32x128xf32, #tpu.memory_space<vmem>>, vector<32x128xf32>
    %cst_79 = arith.constant dense<0.000000e+00> : vector<8x128xf32>
    %471 = tpu.matmul %469, %470, %cst_79 {dimension_numbers = #tpu.dot_dimension_numbers<[1], [0], [0], [1], [0, 0, 1, 1], [], []>} : vector<8x32xf32>, vector<32x128xf32>, vector<8x128xf32> -> vector<8x128xf32>
    %c0_80 = arith.constant 0 : index
    %c0_81 = arith.constant 0 : index
    %472 = vector.load %arg8[%c0_80, %c0_81] : memref<1x128xf32, #tpu.memory_space<vmem>>, vector<1x128xf32>
    %473 = vector.broadcast %472 : vector<1x128xf32> to vector<8x128xf32>
    %474 = arith.addf %471, %473 : vector<8x128xf32>
    %c0_82 = arith.constant 0 : index
    %c0_83 = arith.constant 0 : index
    %475 = vector.load %arg12[%c0_82, %c0_83] : memref<8x128xf32, #tpu.memory_space<vmem>>, vector<8x128xf32>
    tpu.vector_store %arg12[%c0_82, %c0_83], %474 {strides = array<i32>} : memref<8x128xf32, #tpu.memory_space<vmem>>, vector<8x128xf32>,
    %c0_84 = arith.constant 0 : index
    %c0_85 = arith.constant 0 : index
    %c0_86 = arith.constant 0 : index
    %476 = vector.load %arg9[%c0_84, %c0_85, %c0_86] : memref<8x16x64xbf16, #tpu.memory_space<vmem>>, vector<8x16x64xbf16>
    %cst_87 = arith.constant dense<0.000000e+00> : vector<8x32xf32>
    %477 = vector.multi_reduction <add>, %0, %cst_87 [0] : vector<8x8x32xf32> to vector<8x32xf32>
    %cst_88 = arith.constant 8.000000e+00 : f32
    %478 = vector.broadcast %cst_88 : f32 to vector<8x32xf32>
    %479 = arith.divf %477, %478 : vector<8x32xf32>
    %c0_89 = arith.constant 0 : index
    %c0_90 = arith.constant 0 : index
    %480 = vector.load %arg11[%c0_89, %c0_90] : memref<32x32xbf16, #tpu.memory_space<vmem>>, vector<32x32xbf16>
    %481 = arith.truncf %479 : vector<8x32xf32> to vector<8x32xbf16>
    %cst_91 = arith.constant dense<0.000000e+00> : vector<8x32xf32>
    %482 = tpu.matmul %481, %480, %cst_91 {dimension_numbers = #tpu.dot_dimension_numbers<[1], [0], [0], [1], [0, 0, 1, 1], [], []>} : vector<8x32xbf16>, vector<32x32xbf16>, vector<8x32xf32> -> vector<8x32xf32>
    %c0_92 = arith.constant 0 : index
    %c0_93 = arith.constant 0 : index
    %483 = vector.load %arg10[%c0_92, %c0_93] : memref<32x64xbf16, #tpu.memory_space<vmem>>, vector<32x64xbf16>
    %484 = arith.truncf %482 : vector<8x32xf32> to vector<8x32xbf16>
    %cst_94 = arith.constant dense<0.000000e+00> : vector<8x64xf32>
    %485 = tpu.matmul %484, %483, %cst_94 {dimension_numbers = #tpu.dot_dimension_numbers<[1], [0], [0], [1], [0, 0, 1, 1], [], []>} : vector<8x32xbf16>, vector<32x64xbf16>, vector<8x64xf32> -> vector<8x64xf32>
    %486 = vector.shape_cast %485 : vector<8x64xf32> to vector<8x1x64xf32>
    %487 = arith.truncf %486 : vector<8x1x64xf32> to vector<8x1x64xbf16>
    "tpu.trace_start"() <{level = 10 : i32, message = "bqd,btd->bqt"}> : () -> ()
    %cst_95 = arith.constant dense<0.000000e+00> : vector<8x1x16xf32>
    %488 = tpu.matmul %487, %476, %cst_95 {dimension_numbers = #tpu.dot_dimension_numbers<[2], [2], [1], [1], [0, 0, 0, 1, 1, 1], [0], [0]>} : vector<8x1x64xbf16>, vector<8x16x64xbf16>, vector<8x1x16xf32> -> vector<8x1x16xf32>
    "tpu.trace_stop"() : () -> ()
    %489 = vector.shape_cast %488 : vector<8x1x16xf32> to vector<8x16xf32>
    %cst_96 = arith.constant dense<0xFF800000> : vector<8xf32>
    %490 = vector.multi_reduction <maximumf>, %489, %cst_96 [1] : vector<8x16xf32> to vector<8xf32>
    %491 = vector.shape_cast %490 : vector<8xf32> to vector<8x1xf32>
    %492 = vector.broadcast %491 : vector<8x1xf32> to vector<8x16xf32>
    %493 = arith.subf %489, %492 : vector<8x16xf32>
    %494 = math.exp %493 : vector<8x16xf32>
    %cst_97 = arith.constant dense<0.000000e+00> : vector<8xf32>
    %495 = vector.multi_reduction <add>, %494, %cst_97 [1] : vector<8x16xf32> to vector<8xf32>
    %496 = vector.shape_cast %495 : vector<8xf32> to vector<8x1xf32>
    %497 = tpu.reciprocal %496 {approx = true} : vector<8x1xf32> -> vector<8x1xf32>
    %498 = vector.broadcast %497 : vector<8x1xf32> to vector<8x16xf32>
    %499 = arith.mulf %494, %498 : vector<8x16xf32>
    %c0_98 = arith.constant 0 : index
    %c0_99 = arith.constant 0 : index
    %500 = vector.load %arg13[%c0_98, %c0_99] : memref<8x16xf32, #tpu.memory_space<vmem>>, vector<8x16xf32>
    tpu.vector_store %arg13[%c0_98, %c0_99], %499 {strides = array<i32>} : memref<8x16xf32, #tpu.memory_space<vmem>>, vector<8x16xf32>,
    %cst_100 = arith.constant 6.250000e-02 : f32
    %501 = vector.broadcast %cst_100 : f32 to vector<8x16xf32>
    %502 = vector.shape_cast %499 : vector<8x16xf32> to vector<8x1x16xf32>
    %503 = vector.shape_cast %501 : vector<8x16xf32> to vector<8x1x16xf32>
    %504 = tpu.concatenate %502, %503 in 1 : vector<8x1x16xf32>, vector<8x1x16xf32> -> vector<8x2x16xf32>
    %505 = arith.truncf %504 : vector<8x2x16xf32> to vector<8x2x16xbf16>
    "tpu.trace_start"() <{level = 10 : i32, message = "bqt,btd->bqd"}> : () -> ()
    %cst_101 = arith.constant dense<0.000000e+00> : vector<8x2x64xf32>
    %506 = tpu.matmul %505, %476, %cst_101 {dimension_numbers = #tpu.dot_dimension_numbers<[2], [1], [1], [2], [0, 0, 0, 1, 1, 2], [0], [0]>} : vector<8x2x16xbf16>, vector<8x16x64xbf16>, vector<8x2x64xf32> -> vector<8x2x64xf32>
    "tpu.trace_stop"() : () -> ()
    %507 = vector.extract_strided_slice %506 {offsets = [0, 0, 0], sizes = [8, 1, 64], strides = [1, 1, 1]} : vector<8x2x64xf32> to vector<8x1x64xf32>
    %508 = vector.shape_cast %507 : vector<8x1x64xf32> to vector<8x64xf32>
    %c0_102 = arith.constant 0 : index
    %c0_103 = arith.constant 0 : index
    %509 = vector.load %arg14[%c0_102, %c0_103] : memref<8x64xf32, #tpu.memory_space<vmem>>, vector<8x64xf32>
    tpu.vector_store %arg14[%c0_102, %c0_103], %508 {strides = array<i32>} : memref<8x64xf32, #tpu.memory_space<vmem>>, vector<8x64xf32>,
    %510 = vector.extract_strided_slice %506 {offsets = [0, 1, 0], sizes = [8, 1, 64], strides = [1, 1, 1]} : vector<8x2x64xf32> to vector<8x1x64xf32>
    %511 = vector.shape_cast %510 : vector<8x1x64xf32> to vector<8x64xf32>
    %c0_104 = arith.constant 0 : index
    %c0_105 = arith.constant 0 : index
    %512 = vector.load %arg15[%c0_104, %c0_105] : memref<8x64xf32, #tpu.memory_space<vmem>>, vector<8x64xf32>
    tpu.vector_store %arg15[%c0_104, %c0_105], %511 {strides = array<i32>} : memref<8x64xf32, #tpu.memory_space<vmem>>, vector<8x64xf32>,
    return
  }
  func.func @transform_0(%arg0: i32) -> (i32, i32, i32) {
    %c0_i32 = arith.constant 0 : i32
    %c0_i32_0 = arith.constant 0 : i32
    %c0_i32_1 = arith.constant 0 : i32
    return %c0_i32, %arg0, %c0_i32_0 : i32, i32, i32
  }
  func.func @transform_1(%arg0: i32) -> (i32, i32) {
    %c0_i32 = arith.constant 0 : i32
    %c0_i32_0 = arith.constant 0 : i32
    %c0_i32_1 = arith.constant 0 : i32
    return %c0_i32, %c0_i32_0 : i32, i32
  }
  func.func @transform_2(%arg0: i32) -> (i32, i32) {
    %c0_i32 = arith.constant 0 : i32
    %c0_i32_0 = arith.constant 0 : i32
    %c0_i32_1 = arith.constant 0 : i32
    return %c0_i32, %c0_i32_0 : i32, i32
  }
  func.func @transform_3(%arg0: i32) -> (i32, i32) {
    %c0_i32 = arith.constant 0 : i32
    %c0_i32_0 = arith.constant 0 : i32
    %c0_i32_1 = arith.constant 0 : i32
    return %c0_i32, %c0_i32_0 : i32, i32
  }
  func.func @transform_4(%arg0: i32) -> (i32, i32) {
    %c0_i32 = arith.constant 0 : i32
    %c0_i32_0 = arith.constant 0 : i32
    %c0_i32_1 = arith.constant 0 : i32
    return %c0_i32, %c0_i32_0 : i32, i32
  }
  func.func @transform_5(%arg0: i32) -> (i32, i32) {
    %c0_i32 = arith.constant 0 : i32
    %c0_i32_0 = arith.constant 0 : i32
    %c0_i32_1 = arith.constant 0 : i32
    return %c0_i32, %c0_i32_0 : i32, i32
  }
  func.func @transform_6(%arg0: i32) -> (i32, i32) {
    %c0_i32 = arith.constant 0 : i32
    %c0_i32_0 = arith.constant 0 : i32
    %c0_i32_1 = arith.constant 0 : i32
    return %c0_i32, %c0_i32_0 : i32, i32
  }
  func.func @transform_7(%arg0: i32) -> (i32, i32) {
    %c0_i32 = arith.constant 0 : i32
    %c0_i32_0 = arith.constant 0 : i32
    %c0_i32_1 = arith.constant 0 : i32
    return %c0_i32, %c0_i32_0 : i32, i32
  }
  func.func @transform_8(%arg0: i32) -> (i32, i32, i32) {
    %c0_i32 = arith.constant 0 : i32
    %c0_i32_0 = arith.constant 0 : i32
    %c0_i32_1 = arith.constant 0 : i32
    return %arg0, %c0_i32, %c0_i32_0 : i32, i32, i32
  }
  func.func @transform_9(%arg0: i32) -> (i32, i32) {
    %c0_i32 = arith.constant 0 : i32
    %c0_i32_0 = arith.constant 0 : i32
    %c0_i32_1 = arith.constant 0 : i32
    return %c0_i32, %c0_i32_0 : i32, i32
  }
  func.func @transform_10(%arg0: i32) -> (i32, i32) {
    %c0_i32 = arith.constant 0 : i32
    %c0_i32_0 = arith.constant 0 : i32
    %c0_i32_1 = arith.constant 0 : i32
    return %c0_i32, %c0_i32_0 : i32, i32
  }
  func.func @transform_11(%arg0: i32) -> (i32, i32) {
    %c0_i32 = arith.constant 0 : i32
    %c0_i32_0 = arith.constant 0 : i32
    return %arg0, %c0_i32 : i32, i32
  }
  func.func @transform_12(%arg0: i32) -> (i32, i32) {
    %c0_i32 = arith.constant 0 : i32
    %c0_i32_0 = arith.constant 0 : i32
    return %arg0, %c0_i32 : i32, i32
  }
  func.func @transform_13(%arg0: i32) -> (i32, i32) {
    %c0_i32 = arith.constant 0 : i32
    %c0_i32_0 = arith.constant 0 : i32
    return %arg0, %c0_i32 : i32, i32
  }
  func.func @transform_14(%arg0: i32) -> (i32, i32) {
    %c0_i32 = arith.constant 0 : i32
    %c0_i32_0 = arith.constant 0 : i32
    return %arg0, %c0_i32 : i32, i32
  }
}

</mosaic_0001>

<bundles_post_ra>
// kernel: duo_stream_forward.1
= control target key start
LH: loop header
LB: loop body
LE: loop exit
PB: predicated region body
PF: predicated region fallthrough
CT: control target
= control target key end

     0   :  { %v3912_v2 = vmov 0.0   ;;  %vm3913_vm0 = vmmov 0   ;;  %vm62_vm1 = vcmask 261120   ;;  %s3914_s17 = smov 64   ;;  %s3915_s18 = smov 32   ;;  %vm411_vm2 = vcmask 523264   ;;  %s4780_s1 = inlined_call_operand.vmem [shape: f32[32,128], index: 1, kind: input, shape index: {}]   ;;  %s4781_s2 = inlined_call_operand.vmem [shape: f32[32,128], index: 2, kind: input, shape index: {}]   ;;  %s4782_s0 = inlined_call_operand.vmem [shape: f32[8,8,32], index: 0, kind: input, shape index: {}]   ;;  %s4783_s3 = inlined_call_operand.vmem [shape: f32[1,128], index: 3, kind: input, shape index: {}]   ;;  %s4784_s4 = inlined_call_operand.vmem [shape: f32[64,128], index: 4, kind: input, shape index: {}]   ;;  %s4785_s5 = inlined_call_operand.vmem [shape: f32[1,128], index: 5, kind: input, shape index: {}]   ;;  %s4786_s10 = inlined_call_operand.vmem [shape: bf16[32,32], index: 10, kind: input, shape index: {}]   ;;  %s4787_s6 = inlined_call_operand.vmem [shape: f32[32,128], index: 6, kind: input, shape index: {}]   ;;  %s4788_s9 = inlined_call_operand.vmem [shape: bf16[32,64], index: 9, kind: input, shape index: {}]   ;;  %s4789_s8 = inlined_call_operand.vmem [shape: bf16[8,16,64], index: 8, kind: input, shape index: {}]   ;;  %s4790_s7 = inlined_call_operand.vmem [shape: f32[1,128], index: 7, kind: input, shape index: {}]   ;;  %s4791_s11 = inlined_call_operand.vmem [shape: f32[8,128], index: 11, kind: output, shape index: {0}]   ;;  %s4792_s12 = inlined_call_operand.vmem [shape: f32[8,16], index: 12, kind: output, shape index: {1}]   ;;  %s4793_s14 = inlined_call_operand.vmem [shape: f32[8,64], index: 14, kind: output, shape index: {3}]   ;;  %s4794_s13 = inlined_call_operand.vmem [shape: f32[8,64], index: 13, kind: output, shape index: {2}]  }
   0x1   :  { %v54_v0 = vld [vmem:[%s4780_s1 + $0x18] sm:$0xff]  ;;  %v53_v1 = vld [vmem:[%s4780_s1 + $0x10] sm:$0xff]  ;;  %3377 = vmatprep.subr.mxu1 %v3912_v2  ;;  %3385 = vmatprep.mubr.msk.f32.mxu1 %vm3913_vm0, %v3912_v2  ;;  %v52_v5 = vld [vmem:[%s4780_s1 + $0x8] sm:$0xff]  ;;  %vm2556_vm3 = vcmask 1041409   ;;  %vm2559_vm4 = vcmask 1042434   ;;  %vm2562_vm5 = vcmask 1043459  }
   0x2   :  { %v4002_v3 = vld [vmem:[%s4781_s2 + $0x18] sm:$0xff]  ;;  %3357 = vmatprep.subr.mxu0 %v54_v0  ;;  %v4010_v4 = vld [vmem:[%s4781_s2 + $0x10] sm:$0xff]  ;;  %v43_v6 = vld [vmem:[%s4782_s0] sm:$0xff]  ;;  %vm2565_vm6 = vcmask 1044484   ;;  %vm2568_vm7 = vcmask 1045509   ;;  %vm2571_vm8 = vcmask 1046534  }
   0x3   :  { %3378 = vmatpush3.msra.mxu1 %v4002_v3  ;;  %3358 = vmatpush3.msra.mxu0 %v54_v0  ;;  %v44_v7 = vld [vmem:[%s4782_s0 + $0x8] sm:$0xff]  ;;  %v1936_v8 = vsel %vm62_vm1, %v43_v6, 0.0  ;;  %v51_v11 = vld [vmem:[%s4780_s1] sm:$0xff]  ;;  %v45_v31 = vld [vmem:[%s4782_s0 + $0x10] sm:$0xff]  ;;  %vm2574_vm9 = vcmask 1047559   ;;  %vm2577_vm10 = vcmask 130048  }
   0x4   :  { %3379 = vmatprep.subr.mxu1 %v3912_v2  ;;  %3359 = vmatprep.subr.mxu0 %v53_v1  ;;  %v1937_v9 = vsel %vm62_vm1, %v44_v7, 0.0  ;;  %v4028_v10 = vld [vmem:[%s4781_s2 + $0x8] sm:$0xff]  ;;  %v4038_v13 = vld [vmem:[%s4781_s2] sm:$0xff]  ;;  %v46_v32 = vld [vmem:[%s4782_s0 + $0x18] sm:$0xff]  ;;  %v1939_v34 = vsel %vm62_vm1, %v45_v31, 0.0  ;;  %vm2696_vm11 = vcmask 1040384  }
   0x5   :  { %3380 = vmatpush3.msra.mxu1 %v4010_v4  ;;  %3360 = vmatpush3.msra.mxu0 %v53_v1  ;;  %v1938_v12 = vadd.f32 %v1937_v9, %v1936_v8  ;;  %v4062_v16 = vld [vmem:[%s4783_s3] ss:$0 sm:$0xff]  ;;  %v4079_v33 = vld [vmem:[%s4784_s4 + $0x38] sm:$0xff]  ;;  %v4086_v35 = vld [vmem:[%s4784_s4 + $0x30] sm:$0xff]  ;;  %v1941_v36 = vsel %vm62_vm1, %v46_v32, 0.0  ;;  %vm3097_vm12 = vcmask 523265  }
   0x6   :  { %3381 = vmatprep.subr.mxu1 %v3912_v2  ;;  %3361 = vmatprep.subr.mxu0 %v52_v5  ;;  %v47_v37 = vld [vmem:[%s4782_s0 + $0x20] sm:$0xff]  ;;  %v4098_v39 = vld [vmem:[%s4784_s4 + $0x28] sm:$0xff]  ;;  %v49_v45 = vld [vmem:[%s4782_s0 + $0x30] sm:$0xff]  ;;  %vm3099_vm13 = vcmask 516096  }
   0x7   :  { %3365 = vmatprep.mubr.msk.f32.mxu0 %vm62_vm1, %v43_v6  ;;  %3362 = vmatpush3.msra.mxu0 %v52_v5  ;;  %v1940_v38 = vadd.f32 %v1939_v34, %v1938_v12  ;;  %v1943_v40 = vsel %vm62_vm1, %v47_v37, 0.0  ;;  %v48_v42 = vld [vmem:[%s4782_s0 + $0x28] sm:$0xff]  ;;  %v4110_v43 = vld [vmem:[%s4784_s4 + $0x20] sm:$0xff]  ;;  %v4122_v47 = vld [vmem:[%s4784_s4 + $0x18] sm:$0xff]  ;;  %v1947_v48 = vsel %vm62_vm1, %v49_v45, 0.0 }
   0x8   :  { %3382 = vmatpush3.msra.mxu1 %v4028_v10  ;;  %3363 = vmatprep.subr.mxu0 %v51_v11  ;;  %v1945_v44 = vsel %vm62_vm1, %v48_v42, 0.0  ;;  %v50_v50 = vld [vmem:[%s4782_s0 + $0x38] sm:$0xff]  ;;  %v4134_v51 = vld [vmem:[%s4784_s4 + $0x10] sm:$0xff]  ;;  %v4143_v55 = vld [vmem:[%s4784_s4 + $0x8] sm:$0xff] }
   0x9   :  { %3383 = vmatprep.subr.mxu1 %v3912_v2  ;;  %3364 = vmatpush3.msra.mxu0 %v51_v11  ;;  %v1942_v41 = vadd.f32 %v1941_v36, %v1940_v38  ;;  %v1949_v52 = vsel %vm62_vm1, %v50_v50, 0.0  ;;  %v4157_v57 = vld [vmem:[%s4784_s4] sm:$0xff] }
   0xa   :  { %3384 = vmatpush3.msra.mxu1 %v4038_v13  ;;  %3366 = vmatmul.mubr.msk.f32.vlgmr.msra.gmra.mxu0 %vm62_vm1, %v44_v7  ;;  %v4210_v8 = vld [vmem:[%s4785_s5] ss:$0 sm:$0xff] }
   0xb   :  { %3386 = vmatmul.mubr.f32.vlgmr.msra.gmra.mxu1 %v3912_v2  ;;  %3399 = vmatprep.subr.mxu0 %v3912_v2  ;;  %v1944_v46 = vadd.f32 %v1943_v40, %v1942_v41 }
   0xc   :  { %3388 = vmatprep.subr.mxu1 %v3912_v2  ;;  %3396 = vmatprep.mubr.msk.f32.mxu1 %vm3913_vm0, %v3912_v2 }
   0xd   :  { %3389 = vmatpush3.msra.mxu1 %v4002_v3  ;;  %3368 = vmatprep.mubr.msk.f32.mxu0 %vm62_vm1, %v45_v31  ;;  %v1946_v49 = vadd.f32 %v1945_v44, %v1944_v46 }
   0xe   :  { %3390 = vmatprep.subr.mxu1 %v3912_v2  ;;  %3400 = vmatpush3.msra.mxu0 %v4079_v33 }
   0xf   :  { %3391 = vmatpush3.msra.mxu1 %v4010_v4  ;;  %3401 = vmatprep.subr.mxu0 %v3912_v2  ;;  %v1948_v54 = vadd.f32 %v1947_v48, %v1946_v49 }
  0x10   :  { %3392 = vmatprep.subr.mxu1 %v3912_v2  ;;  %3369 = vmatmul.mubr.msk.f32.gmra.mxu0 %vm62_vm1, %v46_v32 }
  0x11   :  { %3393 = vmatpush3.msra.mxu1 %v4028_v10  ;;  %3402 = vmatpush3.msra.mxu0 %v4086_v35  ;;  %v4146_v56 = vadd.f32 %v1949_v52, %v1948_v54 }
  0x12   :  { %3394 = vmatprep.subr.mxu1 %v3912_v2  ;;  %3371 = vmatprep.mubr.msk.f32.mxu0 %vm62_vm1, %v47_v37 }
  0x13   :  { %3395 = vmatpush3.msra.mxu1 %v4038_v13  ;;  %3403 = vmatprep.subr.mxu0 %v3912_v2 }
  0x14   :  { %3418 = vmatprep.subr.mxu1 %v3912_v2  ;;  %3404 = vmatpush3.msra.mxu0 %v4098_v39 }
  0x15   :  { %3405 = vmatprep.subr.mxu0 %v3912_v2  ;;  %3372 = vmatmul.mubr.msk.f32.gmra.mxu0 %vm62_vm1, %v48_v42 }
  0x16   :  { %3406 = vmatpush3.msra.mxu0 %v4110_v43  ;;  %3374 = vmatprep.mubr.msk.f32.mxu0 %vm62_vm1, %v49_v45 }
  0x17   :  { %3407 = vmatprep.subr.mxu0 %v3912_v2 }
  0x18   :  { %3408 = vmatpush3.msra.mxu0 %v4122_v47 }
  0x19   :  { %3409 = vmatprep.subr.mxu0 %v3912_v2  ;;  %3375 = vmatmul.mubr.msk.f32.gmra.mxu0 %vm62_vm1, %v50_v50 }
  0x1a   :  { %3410 = vmatpush3.msra.mxu0 %v4134_v51  ;;  %3415 = vmatprep.mubr.msk.f32.mxu0 %vm3913_vm0, %v3912_v2 }
  0x1b   :  { %3411 = vmatprep.subr.mxu0 %v3912_v2 }
  0x1c   :  { %3412 = vmatpush3.msra.mxu0 %v4143_v55 }
  0x1d   :  { %3413 = vmatprep.subr.mxu0 %v3912_v2 }
  0x1e   :  { %3414 = vmatpush3.msra.mxu0 %v4157_v57 }
  0x1f   :  { %3429 = vmatprep.subr.mxu0 %v3912_v2 }
  0xca   :  { %v4057_v14 = vpop.f32.mrf.mxu0 }
  0xcb   :  { %v280_v15 = vpop.f32.mrf.mxu1  ;;  %v159_v7 = vadd.f32 %v4057_v14, %v4062_v16 }
  0xcc   :  { %v153_v17 = vpop.f32.mrf.mxu0 }
  0xcd   :  { %v3387_v18 = vpop.f32.mrf.mxu1  ;;  %v154_v19 = vadd.f32 %v4062_v16, %v153_v17 }
  0xcf   :  { %v284_v20 = vadd.f32 %v280_v15, %v154_v19 }
  0xd0   :  { %v4193_v62 = vpop.f32.mrf.mxu0 }
  0xd1   :  { %3757 = vtanh.f32 %v284_v20  ;;  %v3127_v22 = vmul.f32 -1.442695, %v284_v20 }
  0xd2   :  { %v4195_v63 = vpop.f32.mrf.mxu0 }
  0xd3   :  { %3759 = vpow2.f32 %v3127_v22 }
  0xd5   :  { %v4197_v0 = vpop.f32.mrf.mxu0 }
  0xd7   :  { %v4199_v1 = vpop.f32.mrf.mxu0 }
  0xd9   :  { %v4201_v5 = vpop.f32.mrf.mxu0 }
  0xdb   :  { %v4203_v6 = vpop.f32.mrf.mxu0 }
  0xde   :  { %v3758_v21 = vpop.eup %3757 }
  0xdf   :  { %294 = vrot.lane.b32.xlu0 %v3758_v21, %s3914_s17 }
  0xe0   :  { %v3760_v23 = vpop.eup %3759 }
  0xe1   :  { %v288_v24 = vadd.f32 1.0, %v3760_v23 }
  0xe3   :  { %3761 = vrcp.f32 %v288_v24 }
  0xf0   :  { %v3762_v25 = vpop.eup %3761 }
  0xf1   :  { %v292_v28 = vmul.f32 0.0, %v3762_v25 }
 0x151   :  { %v295_v26 = vpop.permute.xlu0 %294 }
 0x152   :  { %v297_v27 = vmul.f32 %v3762_v25, %v295_v26 }
 0x154   :  { %299 = vrot.lane.b32.xlu0 %v297_v27, %s3915_s18 }
 0x1c6   :  { %v300_v29 = vpop.permute.xlu0 %299 }
 0x1c7   :  { %v4067_v30 = vadd.f32 %v300_v29, %v292_v28 }
 0x1c9   :  { %3763 = vtanh.f32 %v4067_v30 }
 0x1d6   :  { %v3764_v53 = vpop.eup %3763 }
 0x1d7   :  { %305 = vrot.lane.b32.xlu1 %v3764_v53, %s3914_s17  ;;  %v164_v53 = vadd.f32 %v4062_v16, %v4195_v63 }
 0x249   :  { %v306_v58 = vpop.permute.xlu1 %305 }
 0x24a   :  { %v308_v59 = vmul.f32 %v3762_v25, %v306_v58 }
 0x24c   :  { %310 = vrot.lane.b32.xlu1 %v308_v59, %s3915_s18 }
 0x2be   :  { %v311_v60 = vpop.permute.xlu1 %310 }
 0x2bf   :  { %v410_v61 = vsel %vm62_vm1, %v311_v60, 0.0  ;;  %3397 = vmatmul.mubr.msk.f32.vlgmr.msra.gmra.mxu1 %vm62_vm1, %v311_v60 }
 0x2c0   :  { %3416 = vmatmul.mubr.msk.f32.vlgmr.msra.gmra.mxu0 %vm411_vm2, %v410_v61  ;;  %3419 = vmatpush3.msra.mxu1 %v4002_v3 }
 0x2c1   :  { %3430 = vmatpush3.msra.mxu0 %v4079_v33  ;;  %3420 = vmatprep.subr.mxu1 %v3912_v2 }
 0x2c2   :  { %3431 = vmatprep.subr.mxu0 %v3912_v2  ;;  %3421 = vmatpush3.msra.mxu1 %v4010_v4 }
 0x2c3   :  { %3432 = vmatpush3.msra.mxu0 %v4086_v35  ;;  %3422 = vmatprep.subr.mxu1 %v3912_v2 }
 0x2c4   :  { %3433 = vmatprep.subr.mxu0 %v3912_v2  ;;  %3423 = vmatpush3.msra.mxu1 %v4028_v10 }
 0x2c5   :  { %3434 = vmatpush3.msra.mxu0 %v4098_v39  ;;  %3424 = vmatprep.subr.mxu1 %v3912_v2 }
 0x2c6   :  { %3435 = vmatprep.subr.mxu0 %v3912_v2  ;;  %3425 = vmatpush3.msra.mxu1 %v4038_v13 }
 0x2c7   :  { %3436 = vmatpush3.msra.mxu0 %v4110_v43  ;;  %3426 = vmatprep.mubr.msk.f32.mxu1 %vm3913_vm0, %v3912_v2 }
 0x2c8   :  { %3437 = vmatprep.subr.mxu0 %v3912_v2  ;;  %3445 = vmatprep.mubr.msk.f32.mxu0 %vm3913_vm0, %v3912_v2 }
 0x2c9   :  { %3438 = vmatpush3.msra.mxu0 %v4122_v47  ;;  %3448 = vmatprep.subr.mxu1 %v3912_v2 }
 0x2ca   :  { %3439 = vmatprep.subr.mxu0 %v3912_v2 }
 0x2cb   :  { %3440 = vmatpush3.msra.mxu0 %v4134_v51 }
 0x2cc   :  { %3441 = vmatprep.subr.mxu0 %v3912_v2 }
 0x2cd   :  { %3442 = vmatpush3.msra.mxu0 %v4143_v55 }
 0x2ce   :  { %3443 = vmatprep.subr.mxu0 %v3912_v2 }
 0x2cf   :  { %3444 = vmatpush3.msra.mxu0 %v4157_v57 }
 0x2d0   :  { %3478 = vmatprep.subr.mxu0 %v3912_v2 }
 0x37f   :  { %v380_v9 = vpop.f32.mrf.mxu1 }
 0x380   :  { %v384_v11 = vadd.f32 %v380_v9, %v159_v7  ;;  %v481_v12 = vpop.f32.mrf.mxu0 }
 0x381   :  { %v482_v15 = vadd.f32 %v4210_v8, %v481_v12  ;;  %v3398_v17 = vpop.f32.mrf.mxu1 }
 0x382   :  { %3765 = vtanh.f32 %v384_v11  ;;  %v3417_v18 = vpop.f32.mrf.mxu0  ;;  %v3129_v14 = vmul.f32 -1.442695, %v384_v11 }
 0x383   :  { %3767 = vtanh.f32 %v482_v15  ;;  %v3131_v21 = vmul.f32 -1.442695, %v482_v15 }
 0x384   :  { %3769 = vpow2.f32 %v3129_v14 }
 0x385   :  { %3771 = vpow2.f32 %v3131_v21 }
 0x38f   :  { %v3766_v19 = vpop.eup %3765 }
 0x390   :  { %v3768_v20 = vpop.eup %3767  ;;  %394 = vrot.lane.b32.xlu0 %v3766_v19, %s3914_s17 }
 0x391   :  { %494 = vrot.lane.b32.xlu1 %v3768_v20, %s3914_s17  ;;  %v3770_v22 = vpop.eup %3769 }
 0x392   :  { %v3772_v23 = vpop.eup %3771  ;;  %v388_v24 = vadd.f32 1.0, %v3770_v22 }
 0x393   :  { %v488_v25 = vadd.f32 1.0, %v3772_v23 }
 0x394   :  { %3773 = vrcp.f32 %v388_v24 }
 0x395   :  { %3775 = vrcp.f32 %v488_v25 }
 0x3a1   :  { %v3774_v26 = vpop.eup %3773 }
 0x3a2   :  { %v3776_v28 = vpop.eup %3775  ;;  %v392_v34 = vmul.f32 %v3774_v26, %v4067_v30 }
 0x3a3   :  { %v492_v37 = vmul.f32 0.0, %v3776_v28 }
 0x402   :  { %v395_v27 = vpop.permute.xlu0 %394 }
 0x403   :  { %v397_v29 = vmul.f32 %v3774_v26, %v395_v27  ;;  %v495_v31 = vpop.permute.xlu1 %494 }
 0x404   :  { %v497_v32 = vmul.f32 %v3776_v28, %v495_v31 }
 0x405   :  { %399 = vrot.lane.b32.xlu0 %v397_v29, %s3915_s18 }
 0x406   :  { %499 = vrot.lane.b32.xlu1 %v497_v32, %s3915_s18 }
 0x477   :  { %v400_v36 = vpop.permute.xlu0 %399 }
 0x478   :  { %v4218_v38 = vadd.f32 %v400_v36, %v392_v34  ;;  %v500_v40 = vpop.permute.xlu1 %499 }
 0x479   :  { %v4220_v41 = vadd.f32 %v500_v40, %v492_v37 }
 0x47a   :  { %3777 = vtanh.f32 %v4218_v38 }
 0x47b   :  { %3779 = vtanh.f32 %v4220_v41 }
 0x487   :  { %v3778_v42 = vpop.eup %3777 }
 0x488   :  { %v3780_v44 = vpop.eup %3779  ;;  %405 = vrot.lane.b32.xlu0 %v3778_v42, %s3914_s17 }
 0x489   :  { %505 = vrot.lane.b32.xlu1 %v3780_v44, %s3914_s17 }
 0x4fa   :  { %v406_v45 = vpop.permute.xlu0 %405 }
 0x4fb   :  { %v408_v46 = vmul.f32 %v3774_v26, %v406_v45  ;;  %v506_v30 = vpop.permute.xlu1 %505  ;;  %v169_v45 = vadd.f32 %v4193_v62, %v4062_v16 }
 0x4fc   :  { %v508_v48 = vmul.f32 %v3776_v28, %v506_v30 }
 0x4fd   :  { %510 = vrot.lane.b32.xlu0 %v408_v46, %s3915_s18 }
 0x4fe   :  { %611 = vrot.lane.b32.xlu1 %v508_v48, %s3914_s17 }
 0x56f   :  { %v511_v49 = vpop.permute.xlu0 %510 }
 0x570   :  { %3427 = vmatmul.mubr.msk.f32.vlgmr.msra.gmra.mxu1 %vm62_vm1, %v511_v49  ;;  %v612_v50 = vpop.permute.xlu1 %611 }
 0x571   :  { %v614_v52 = vsel %vm62_vm1, %v511_v49, %v612_v50  ;;  %3449 = vmatpush3.msra.mxu1 %v4002_v3  ;;  %3456 = vmatprep.mubr.msk.f32.mxu1 %vm3913_vm0, %v3912_v2 }
 0x572   :  { %3446 = vmatmul.mubr.msk.f32.vlgmr.msra.gmra.mxu0 %vm411_vm2, %v614_v52  ;;  %3450 = vmatprep.subr.mxu1 %v3912_v2 }
 0x573   :  { %3451 = vmatpush3.msra.mxu1 %v4010_v4  ;;  %3479 = vmatpush3.msra.mxu0 %v4002_v3 }
 0x574   :  { %3452 = vmatprep.subr.mxu1 %v3912_v2  ;;  %3480 = vmatprep.subr.mxu0 %v3912_v2 }
 0x575   :  { %3453 = vmatpush3.msra.mxu1 %v4028_v10  ;;  %3481 = vmatpush3.msra.mxu0 %v4010_v4 }
 0x576   :  { %3454 = vmatprep.subr.mxu1 %v3912_v2  ;;  %3482 = vmatprep.subr.mxu0 %v3912_v2 }
 0x577   :  { %3455 = vmatpush3.msra.mxu1 %v4038_v13  ;;  %3483 = vmatpush3.msra.mxu0 %v4028_v10 }
 0x578   :  { %3459 = vmatprep.subr.mxu1 %v3912_v2  ;;  %3484 = vmatprep.subr.mxu0 %v3912_v2 }
 0x579   :  { %3485 = vmatpush3.msra.mxu0 %v4038_v13  ;;  %3486 = vmatprep.mubr.msk.f32.mxu0 %vm3913_vm0, %v3912_v2 }
 0x57a   :  { %3489 = vmatprep.subr.mxu0 %v3912_v2 }
 0x630   :  { %v580_v54 = vpop.f32.mrf.mxu1 }
 0x631   :  { %v584_v58 = vadd.f32 %v580_v54, %v164_v53 }
 0x632   :  { %v3428_v59 = vpop.f32.mrf.mxu1  ;;  %v684_v60 = vpop.f32.mrf.mxu0 }
 0x633   :  { %3781 = vtanh.f32 %v584_v58  ;;  %v685_v61 = vadd.f32 %v4210_v8, %v684_v60  ;;  %v3133_v12 = vmul.f32 -1.442695, %v584_v58 }
 0x634   :  { %v3447_v7 = vpop.f32.mrf.mxu0 }
 0x635   :  { %3783 = vtanh.f32 %v685_v61  ;;  %v3135_v15 = vmul.f32 -1.442695, %v685_v61 }
 0x636   :  { %3785 = vpow2.f32 %v3133_v12 }
 0x637   :  { %3787 = vpow2.f32 %v3135_v15 }
 0x640   :  { %v3782_v9 = vpop.eup %3781 }
 0x641   :  { %594 = vrot.lane.b32.xlu0 %v3782_v9, %s3914_s17 }
 0x642   :  { %v3784_v11 = vpop.eup %3783 }
 0x643   :  { %697 = vrot.lane.b32.xlu1 %v3784_v11, %s3914_s17  ;;  %v3786_v63 = vpop.eup %3785 }
 0x644   :  { %v3788_v17 = vpop.eup %3787  ;;  %v588_v18 = vadd.f32 1.0, %v3786_v63 }
 0x645   :  { %v691_v19 = vadd.f32 1.0, %v3788_v17 }
 0x646   :  { %3789 = vrcp.f32 %v588_v18 }
 0x647   :  { %3791 = vrcp.f32 %v691_v19 }
 0x653   :  { %v3790_v20 = vpop.eup %3789 }
 0x654   :  { %v3792_v22 = vpop.eup %3791  ;;  %v592_v25 = vmul.f32 %v3790_v20, %v4218_v38 }
 0x655   :  { %v695_v28 = vmul.f32 %v3792_v22, %v4220_v41 }
 0x6b3   :  { %v595_v14 = vpop.permute.xlu0 %594 }
 0x6b4   :  { %v597_v21 = vmul.f32 %v3790_v20, %v595_v14 }
 0x6b5   :  { %v698_v23 = vpop.permute.xlu1 %697 }
 0x6b6   :  { %599 = vrot.lane.b32.xlu0 %v597_v21, %s3915_s18  ;;  %v700_v24 = vmul.f32 %v3792_v22, %v698_v23 }
 0x6b8   :  { %702 = vrot.lane.b32.xlu1 %v700_v24, %s3915_s18 }
 0x728   :  { %v600_v26 = vpop.permute.xlu0 %599 }
 0x729   :  { %v4259_v27 = vadd.f32 %v600_v26, %v592_v25 }
 0x72a   :  { %v703_v29 = vpop.permute.xlu1 %702 }
 0x72b   :  { %3793 = vtanh.f32 %v4259_v27  ;;  %v4263_v31 = vadd.f32 %v703_v29, %v695_v28 }
 0x72d   :  { %3795 = vtanh.f32 %v4263_v31 }
 0x738   :  { %v3794_v32 = vpop.eup %3793 }
 0x739   :  { %605 = vrot.lane.b32.xlu0 %v3794_v32, %s3914_s17 }
 0x73a   :  { %v3796_v34 = vpop.eup %3795 }
 0x73b   :  { %708 = vrot.lane.b32.xlu1 %v3796_v34, %s3914_s17  ;;  %v174_v34 = vadd.f32 %v4062_v16, %v4199_v1 }
 0x7ab   :  { %v606_v36 = vpop.permute.xlu0 %605 }
 0x7ac   :  { %v608_v37 = vmul.f32 %v3790_v20, %v606_v36 }
 0x7ad   :  { %v709_v38 = vpop.permute.xlu1 %708 }
 0x7ae   :  { %713 = vrot.lane.b32.xlu0 %v608_v37, %s3915_s18  ;;  %v711_v40 = vmul.f32 %v3792_v22, %v709_v38 }
 0x7b0   :  { %814 = vrot.lane.b32.xlu1 %v711_v40, %s3914_s17 }
 0x820   :  { %v714_v41 = vpop.permute.xlu0 %713 }
 0x821   :  { %3457 = vmatmul.mubr.msk.f32.vlgmr.msra.gmra.mxu1 %vm62_vm1, %v714_v41 }
 0x822   :  { %3460 = vmatpush3.msra.mxu1 %v4079_v33  ;;  %3475 = vmatprep.mubr.msk.f32.mxu1 %vm3913_vm0, %v3912_v2  ;;  %v815_v42 = vpop.permute.xlu1 %814 }
 0x823   :  { %3461 = vmatprep.subr.mxu1 %v3912_v2  ;;  %v817_v44 = vsel %vm62_vm1, %v714_v41, %v815_v42 }
 0x824   :  { %3462 = vmatpush3.msra.mxu1 %v4086_v35 }
 0x825   :  { %3463 = vmatprep.subr.mxu1 %v3912_v2 }
 0x826   :  { %3464 = vmatpush3.msra.mxu1 %v4098_v39 }
 0x827   :  { %3465 = vmatprep.subr.mxu1 %v3912_v2 }
 0x828   :  { %3466 = vmatpush3.msra.mxu1 %v4110_v43 }
 0x829   :  { %3467 = vmatprep.subr.mxu1 %v3912_v2 }
 0x82a   :  { %3468 = vmatpush3.msra.mxu1 %v4122_v47 }
 0x82b   :  { %3469 = vmatprep.subr.mxu1 %v3912_v2 }
 0x82c   :  { %3470 = vmatpush3.msra.mxu1 %v4134_v51 }
 0x82d   :  { %3471 = vmatprep.subr.mxu1 %v3912_v2 }
 0x82e   :  { %3472 = vmatpush3.msra.mxu1 %v4143_v55 }
 0x82f   :  { %3473 = vmatprep.subr.mxu1 %v3912_v2 }
 0x830   :  { %3474 = vmatpush3.msra.mxu1 %v4157_v57 }
 0x831   :  { %3476 = vmatmul.mubr.msk.f32.vlgmr.msra.gmra.mxu1 %vm411_vm2, %v817_v44  ;;  %3508 = vmatprep.subr.mxu1 %v3912_v2 }
 0x832   :  { %3509 = vmatpush3.msra.mxu1 %v4002_v3  ;;  %3516 = vmatprep.mubr.msk.f32.mxu1 %vm3913_vm0, %v3912_v2 }
 0x833   :  { %3510 = vmatprep.subr.mxu1 %v3912_v2 }
 0x834   :  { %3511 = vmatpush3.msra.mxu1 %v4010_v4 }
 0x835   :  { %3512 = vmatprep.subr.mxu1 %v3912_v2 }
 0x836   :  { %3513 = vmatpush3.msra.mxu1 %v4028_v10 }
 0x837   :  { %3514 = vmatprep.subr.mxu1 %v3912_v2 }
 0x838   :  { %3515 = vmatpush3.msra.mxu1 %v4038_v13 }
 0x839   :  { %3519 = vmatprep.subr.mxu1 %v3912_v2 }
 0x8e1   :  { %v783_v46 = vpop.f32.mrf.mxu1 }
 0x8e2   :  { %v787_v30 = vadd.f32 %v783_v46, %v169_v45 }
 0x8e3   :  { %v3458_v48 = vpop.f32.mrf.mxu1 }
 0x8e4   :  { %3797 = vtanh.f32 %v787_v30  ;;  %v3137_v58 = vmul.f32 -1.442695, %v787_v30 }
 0x8f1   :  { %v3798_v49 = vpop.eup %3797  ;;  %v887_v50 = vpop.f32.mrf.mxu1 }
 0x8f2   :  { %v888_v52 = vadd.f32 %v4210_v8, %v887_v50  ;;  %797 = vrot.lane.b32.xlu0 %v3798_v49, %s3914_s17 }
 0x8f3   :  { %v3477_v53 = vpop.f32.mrf.mxu1 }
 0x8f4   :  { %3799 = vtanh.f32 %v888_v52  ;;  %v3139_v59 = vmul.f32 -1.442695, %v888_v52 }
 0x8f5   :  { %3801 = vpow2.f32 %v3137_v58 }
 0x8f6   :  { %3803 = vpow2.f32 %v3139_v59 }
 0x901   :  { %v3800_v54 = vpop.eup %3799 }
 0x902   :  { %900 = vrot.lane.b32.xlu1 %v3800_v54, %s3914_s17  ;;  %v3802_v60 = vpop.eup %3801 }
 0x903   :  { %v791_v62 = vadd.f32 1.0, %v3802_v60  ;;  %v3804_v61 = vpop.eup %3803 }
 0x904   :  { %v894_v7 = vadd.f32 1.0, %v3804_v61 }
 0x905   :  { %3805 = vrcp.f32 %v791_v62 }
 0x906   :  { %3807 = vrcp.f32 %v894_v7 }
 0x912   :  { %v3806_v9 = vpop.eup %3805 }
 0x913   :  { %v3808_v15 = vpop.eup %3807  ;;  %v795_v18 = vmul.f32 %v3806_v9, %v4259_v27 }
 0x914   :  { %v898_v14 = vmul.f32 %v3808_v15, %v4263_v31 }
 0x964   :  { %v798_v11 = vpop.permute.xlu0 %797 }
 0x965   :  { %v800_v12 = vmul.f32 %v3806_v9, %v798_v11 }
 0x967   :  { %802 = vrot.lane.b32.xlu0 %v800_v12, %s3915_s18 }
 0x974   :  { %v901_v63 = vpop.permute.xlu1 %900 }
 0x975   :  { %v903_v17 = vmul.f32 %v3808_v15, %v901_v63 }
 0x977   :  { %905 = vrot.lane.b32.xlu1 %v903_v17, %s3915_s18 }
 0x9d9   :  { %v803_v19 = vpop.permute.xlu0 %802 }
 0x9da   :  { %v4309_v20 = vadd.f32 %v803_v19, %v795_v18 }
 0x9dc   :  { %3809 = vtanh.f32 %v4309_v20 }
 0x9e9   :  { %v3810_v21 = vpop.eup %3809  ;;  %v906_v22 = vpop.permute.xlu1 %905 }
 0x9ea   :  { %v4313_v23 = vadd.f32 %v906_v22, %v898_v14  ;;  %808 = vrot.lane.b32.xlu0 %v3810_v21, %s3914_s17 }
 0x9ec   :  { %3811 = vtanh.f32 %v4313_v23 }
 0x9f9   :  { %v3812_v24 = vpop.eup %3811 }
 0x9fa   :  { %911 = vrot.lane.b32.xlu1 %v3812_v24, %s3914_s17 }
 0xa5c   :  { %v809_v25 = vpop.permute.xlu0 %808 }
 0xa5d   :  { %v811_v26 = vmul.f32 %v3806_v9, %v809_v25 }
 0xa5f   :  { %916 = vrot.lane.b32.xlu0 %v811_v26, %s3915_s18 }
 0xa6c   :  { %v912_v27 = vpop.permute.xlu1 %911 }
 0xa6d   :  { %v914_v28 = vmul.f32 %v3808_v15, %v912_v27 }
 0xa6f   :  { %1017 = vrot.lane.b32.xlu1 %v914_v28, %s3914_s17 }
 0xad1   :  { %v917_v29 = vpop.permute.xlu0 %916 }
 0xad2   :  { %3487 = vmatmul.mubr.msk.f32.vlgmr.msra.gmra.mxu0 %vm62_vm1, %v917_v29 }
 0xad3   :  { %3490 = vmatpush3.msra.mxu0 %v4079_v33  ;;  %3505 = vmatprep.mubr.msk.f32.mxu0 %vm3913_vm0, %v3912_v2 }
 0xad4   :  { %3491 = vmatprep.subr.mxu0 %v3912_v2 }
 0xad5   :  { %3492 = vmatpush3.msra.mxu0 %v4086_v35 }
 0xad6   :  { %3493 = vmatprep.subr.mxu0 %v3912_v2 }
 0xad7   :  { %3494 = vmatpush3.msra.mxu0 %v4098_v39 }
 0xad8   :  { %3495 = vmatprep.subr.mxu0 %v3912_v2 }
 0xad9   :  { %3496 = vmatpush3.msra.mxu0 %v4110_v43 }
 0xada   :  { %3497 = vmatprep.subr.mxu0 %v3912_v2 }
 0xadb   :  { %3498 = vmatpush3.msra.mxu0 %v4122_v47 }
 0xadc   :  { %3499 = vmatprep.subr.mxu0 %v3912_v2 }
 0xadd   :  { %3500 = vmatpush3.msra.mxu0 %v4134_v51 }
 0xade   :  { %3501 = vmatprep.subr.mxu0 %v3912_v2 }
 0xadf   :  { %3502 = vmatpush3.msra.mxu0 %v4143_v55 }
 0xae0   :  { %3503 = vmatprep.subr.mxu0 %v3912_v2 }
 0xae1   :  { %v1018_v31 = vpop.permute.xlu1 %1017  ;;  %3504 = vmatpush3.msra.mxu0 %v4157_v57 }
 0xae2   :  { %v1020_v32 = vsel %vm62_vm1, %v917_v29, %v1018_v31  ;;  %3538 = vmatprep.subr.mxu0 %v3912_v2 }
 0xae3   :  { %3506 = vmatmul.mubr.msk.f32.vlgmr.msra.gmra.mxu0 %vm411_vm2, %v1020_v32 }
 0xae4   :  { %3539 = vmatpush3.msra.mxu0 %v4002_v3  ;;  %3546 = vmatprep.mubr.msk.f32.mxu0 %vm3913_vm0, %v3912_v2 }
 0xae5   :  { %3540 = vmatprep.subr.mxu0 %v3912_v2 }
 0xae6   :  { %3541 = vmatpush3.msra.mxu0 %v4010_v4 }
 0xae7   :  { %3542 = vmatprep.subr.mxu0 %v3912_v2 }
 0xae8   :  { %3543 = vmatpush3.msra.mxu0 %v4028_v10 }
 0xae9   :  { %3544 = vmatprep.subr.mxu0 %v3912_v2 }
 0xaea   :  { %3545 = vmatpush3.msra.mxu0 %v4038_v13 }
 0xaeb   :  { %3549 = vmatprep.subr.mxu0 %v3912_v2 }
 0xb92   :  { %v986_v36 = vpop.f32.mrf.mxu0 }
 0xb93   :  { %v990_v37 = vadd.f32 %v986_v36, %v174_v34 }
 0xb94   :  { %v3488_v38 = vpop.f32.mrf.mxu0 }
 0xb95   :  { %3813 = vtanh.f32 %v990_v37  ;;  %v3141_v46 = vmul.f32 -1.442695, %v990_v37 }
 0xba2   :  { %v3814_v40 = vpop.eup %3813 }
 0xba3   :  { %v1090_v41 = vpop.f32.mrf.mxu0  ;;  %1000 = vrot.lane.b32.xlu0 %v3814_v40, %s3914_s17 }
 0xba4   :  { %v1091_v42 = vadd.f32 %v4210_v8, %v1090_v41 }
 0xba5   :  { %v3507_v44 = vpop.f32.mrf.mxu0 }
 0xba6   :  { %3815 = vtanh.f32 %v1091_v42  ;;  %v3143_v48 = vmul.f32 -1.442695, %v1091_v42 }
 0xba7   :  { %3817 = vpow2.f32 %v3141_v46 }
 0xba8   :  { %3819 = vpow2.f32 %v3143_v48 }
 0xbb3   :  { %v3816_v45 = vpop.eup %3815 }
 0xbb4   :  { %1103 = vrot.lane.b32.xlu1 %v3816_v45, %s3914_s17  ;;  %v3818_v30 = vpop.eup %3817 }
 0xbb5   :  { %v994_v1 = vadd.f32 1.0, %v3818_v30  ;;  %v3820_v49 = vpop.eup %3819 }
 0xbb6   :  { %v1097_v52 = vadd.f32 1.0, %v3820_v49 }
 0xbb7   :  { %3821 = vrcp.f32 %v994_v1 }
 0xbb8   :  { %3823 = vrcp.f32 %v1097_v52 }
 0xbc4   :  { %v3822_v50 = vpop.eup %3821 }
 0xbc5   :  { %v3824_v58 = vpop.eup %3823  ;;  %v998_v62 = vmul.f32 %v3822_v50, %v4309_v20 }
 0xbc6   :  { %v1101_v11 = vmul.f32 %v3824_v58, %v4313_v23 }
 0xc15   :  { %v1001_v53 = vpop.permute.xlu0 %1000 }
 0xc16   :  { %v1003_v54 = vmul.f32 %v3822_v50, %v1001_v53 }
 0xc18   :  { %1005 = vrot.lane.b32.xlu0 %v1003_v54, %s3915_s18 }
 0xc26   :  { %v1104_v59 = vpop.permute.xlu1 %1103 }
 0xc27   :  { %v1106_v60 = vmul.f32 %v3824_v58, %v1104_v59 }
 0xc29   :  { %1108 = vrot.lane.b32.xlu1 %v1106_v60, %s3915_s18 }
 0xc8a   :  { %v1006_v61 = vpop.permute.xlu0 %1005 }
 0xc8b   :  { %v4359_v7 = vadd.f32 %v1006_v61, %v998_v62 }
 0xc8d   :  { %3825 = vtanh.f32 %v4359_v7 }
 0xc9a   :  { %v3826_v9 = vpop.eup %3825 }
 0xc9b   :  { %v1109_v12 = vpop.permute.xlu1 %1108  ;;  %1011 = vrot.lane.b32.xlu0 %v3826_v9, %s3914_s17 }
 0xc9c   :  { %v4364_v15 = vadd.f32 %v1109_v12, %v1101_v11 }
 0xc9e   :  { %3827 = vtanh.f32 %v4364_v15 }
 0xcab   :  { %v3828_v63 = vpop.eup %3827 }
 0xcac   :  { %1114 = vrot.lane.b32.xlu1 %v3828_v63, %s3914_s17 }
 0xd0d   :  { %v1012_v17 = vpop.permute.xlu0 %1011 }
 0xd0e   :  { %v1014_v18 = vmul.f32 %v3822_v50, %v1012_v17 }
 0xd10   :  { %1119 = vrot.lane.b32.xlu0 %v1014_v18, %s3915_s18 }
 0xd1e   :  { %v1115_v19 = vpop.permute.xlu1 %1114 }
 0xd1f   :  { %v1117_v20 = vmul.f32 %v3824_v58, %v1115_v19 }
 0xd21   :  { %1220 = vrot.lane.b32.xlu1 %v1117_v20, %s3914_s17 }
 0xd82   :  { %v1120_v14 = vpop.permute.xlu0 %1119 }
 0xd83   :  { %3517 = vmatmul.mubr.msk.f32.vlgmr.msra.gmra.mxu1 %vm62_vm1, %v1120_v14 }
 0xd84   :  { %3520 = vmatpush3.msra.mxu1 %v4079_v33  ;;  %3535 = vmatprep.mubr.msk.f32.mxu1 %vm3913_vm0, %v3912_v2 }
 0xd85   :  { %3521 = vmatprep.subr.mxu1 %v3912_v2 }
 0xd86   :  { %3522 = vmatpush3.msra.mxu1 %v4086_v35 }
 0xd87   :  { %3523 = vmatprep.subr.mxu1 %v3912_v2 }
 0xd88   :  { %3524 = vmatpush3.msra.mxu1 %v4098_v39 }
 0xd89   :  { %3525 = vmatprep.subr.mxu1 %v3912_v2 }
 0xd8a   :  { %3526 = vmatpush3.msra.mxu1 %v4110_v43 }
 0xd8b   :  { %3527 = vmatprep.subr.mxu1 %v3912_v2 }
 0xd8c   :  { %3528 = vmatpush3.msra.mxu1 %v4122_v47 }
 0xd8d   :  { %3529 = vmatprep.subr.mxu1 %v3912_v2 }
 0xd8e   :  { %3530 = vmatpush3.msra.mxu1 %v4134_v51 }
 0xd8f   :  { %3531 = vmatprep.subr.mxu1 %v3912_v2 }
 0xd90   :  { %3532 = vmatpush3.msra.mxu1 %v4143_v55 }
 0xd91   :  { %3533 = vmatprep.subr.mxu1 %v3912_v2 }
 0xd92   :  { %3534 = vmatpush3.msra.mxu1 %v4157_v57 }
 0xd93   :  { %v1221_v21 = vpop.permute.xlu1 %1220  ;;  %3568 = vmatprep.subr.mxu1 %v3912_v2 }
 0xd94   :  { %v1223_v22 = vsel %vm62_vm1, %v1120_v14, %v1221_v21 }
 0xd95   :  { %3536 = vmatmul.mubr.msk.f32.vlgmr.msra.gmra.mxu1 %vm411_vm2, %v1223_v22 }
 0xd96   :  { %3569 = vmatpush3.msra.mxu1 %v4002_v3  ;;  %3576 = vmatprep.mubr.msk.f32.mxu1 %vm3913_vm0, %v3912_v2  ;;  %v179_v3 = vadd.f32 %v4197_v0, %v4062_v16 }
 0xd97   :  { %3570 = vmatprep.subr.mxu1 %v3912_v2 }
 0xd98   :  { %3571 = vmatpush3.msra.mxu1 %v4010_v4 }
 0xd99   :  { %3572 = vmatprep.subr.mxu1 %v3912_v2 }
 0xd9a   :  { %3573 = vmatpush3.msra.mxu1 %v4028_v10 }
 0xd9b   :  { %3574 = vmatprep.subr.mxu1 %v3912_v2 }
 0xd9c   :  { %3575 = vmatpush3.msra.mxu1 %v4038_v13 }
 0xd9d   :  { %3579 = vmatprep.subr.mxu1 %v3912_v2 }
 0xe43   :  { %v1189_v23 = vpop.f32.mrf.mxu1 }
 0xe44   :  { %v1193_v24 = vadd.f32 %v1189_v23, %v179_v3 }
 0xe45   :  { %v3518_v25 = vpop.f32.mrf.mxu1 }
 0xe46   :  { %3829 = vtanh.f32 %v1193_v24  ;;  %v3145_v13 = vmul.f32 -1.442695, %v1193_v24 }
 0xe53   :  { %v3830_v26 = vpop.eup %3829 }
 0xe54   :  { %1203 = vrot.lane.b32.xlu0 %v3830_v26, %s3914_s17 }
 0xe55   :  { %v1293_v4 = vpop.f32.mrf.mxu1 }
 0xe56   :  { %v1294_v27 = vadd.f32 %v4210_v8, %v1293_v4 }
 0xe57   :  { %v3537_v10 = vpop.f32.mrf.mxu1 }
 0xe58   :  { %3831 = vtanh.f32 %v1294_v27  ;;  %v3147_v31 = vmul.f32 -1.442695, %v1294_v27 }
 0xe59   :  { %3833 = vpow2.f32 %v3145_v13 }
 0xe5a   :  { %3835 = vpow2.f32 %v3147_v31 }
 0xe65   :  { %v3832_v28 = vpop.eup %3831 }
 0xe66   :  { %1306 = vrot.lane.b32.xlu1 %v3832_v28, %s3914_s17  ;;  %v3834_v29 = vpop.eup %3833 }
 0xe67   :  { %v1197_v16 = vadd.f32 1.0, %v3834_v29  ;;  %v3836_v0 = vpop.eup %3835 }
 0xe68   :  { %v1300_v37 = vadd.f32 1.0, %v3836_v0  ;;  %v3905_v0 = vld [vmem:[%s4784_s4 + $0x30] sm:$0xff] }
 0xe69   :  { %3837 = vrcp.f32 %v1197_v16  ;;  %v3904_v16 = vld [vmem:[%s4784_s4 + $0x38] sm:$0xff] }
 0xe6a   :  { %3839 = vrcp.f32 %v1300_v37  ;;  %v3909_v37 = vld [vmem:[%s4784_s4 + $0x10] sm:$0xff] }
 0xe76   :  { %v3838_v32 = vpop.eup %3837 }
 0xe77   :  { %v3840_v38 = vpop.eup %3839  ;;  %v1201_v42 = vmul.f32 %v3838_v32, %v4359_v7 }
 0xe78   :  { %v1304_v30 = vmul.f32 %v3840_v38, %v4364_v15 }
 0xec6   :  { %v1204_v34 = vpop.permute.xlu0 %1203 }
 0xec7   :  { %v1206_v36 = vmul.f32 %v3838_v32, %v1204_v34  ;;  %v3907_v34 = vld [vmem:[%s4784_s4 + $0x20] sm:$0xff] }
 0xec9   :  { %1208 = vrot.lane.b32.xlu0 %v1206_v36, %s3915_s18  ;;  %v3908_v36 = vld [vmem:[%s4784_s4 + $0x18] sm:$0xff] }
 0xed8   :  { %v1307_v40 = vpop.permute.xlu1 %1306 }
 0xed9   :  { %v1309_v41 = vmul.f32 %v3840_v38, %v1307_v40 }
 0xedb   :  { %1311 = vrot.lane.b32.xlu1 %v1309_v41, %s3915_s18 }
 0xf3b   :  { %v1209_v44 = vpop.permute.xlu0 %1208 }
 0xf3c   :  { %v4409_v45 = vadd.f32 %v1209_v44, %v1201_v42 }
 0xf3e   :  { %3841 = vtanh.f32 %v4409_v45 }
 0xf4b   :  { %v3842_v46 = vpop.eup %3841 }
 0xf4c   :  { %1214 = vrot.lane.b32.xlu0 %v3842_v46, %s3914_s17 }
 0xf4d   :  { %v1312_v48 = vpop.permute.xlu1 %1311 }
 0xf4e   :  { %v4414_v1 = vadd.f32 %v1312_v48, %v1304_v30 }
 0xf50   :  { %3843 = vtanh.f32 %v4414_v1 }
 0xf5d   :  { %v3844_v49 = vpop.eup %3843 }
 0xf5e   :  { %1317 = vrot.lane.b32.xlu1 %v3844_v49, %s3914_s17 }
 0xfbe   :  { %v1215_v50 = vpop.permute.xlu0 %1214 }
 0xfbf   :  { %v1217_v52 = vmul.f32 %v3838_v32, %v1215_v50  ;;  %v3906_v32 = vld [vmem:[%s4784_s4 + $0x28] sm:$0xff] }
 0xfc1   :  { %1322 = vrot.lane.b32.xlu0 %v1217_v52, %s3915_s18 }
 0xfd0   :  { %v1318_v53 = vpop.permute.xlu1 %1317 }
 0xfd1   :  { %v1320_v54 = vmul.f32 %v3840_v38, %v1318_v53  ;;  %v3910_v38 = vld [vmem:[%s4784_s4 + $0x8] sm:$0xff] }
 0xfd3   :  { %1423 = vrot.lane.b32.xlu1 %v1320_v54, %s3914_s17 }
0x1033   :  { %v1323_v58 = vpop.permute.xlu0 %1322 }
0x1034   :  { %3547 = vmatmul.mubr.msk.f32.vlgmr.msra.gmra.mxu0 %vm62_vm1, %v1323_v58 }
0x1035   :  { %3550 = vmatpush3.msra.mxu0 %v4079_v33  ;;  %3565 = vmatprep.mubr.msk.f32.mxu0 %vm3913_vm0, %v3912_v2 }
0x1036   :  { %3551 = vmatprep.subr.mxu0 %v3912_v2 }
0x1037   :  { %3552 = vmatpush3.msra.mxu0 %v4086_v35 }
0x1038   :  { %3553 = vmatprep.subr.mxu0 %v3912_v2 }
0x1039   :  { %3554 = vmatpush3.msra.mxu0 %v4098_v39 }
0x103a   :  { %3555 = vmatprep.subr.mxu0 %v3912_v2 }
0x103b   :  { %3556 = vmatpush3.msra.mxu0 %v4110_v43 }
0x103c   :  { %3557 = vmatprep.subr.mxu0 %v3912_v2 }
0x103d   :  { %3558 = vmatpush3.msra.mxu0 %v4122_v47 }
0x103e   :  { %3559 = vmatprep.subr.mxu0 %v3912_v2 }
0x103f   :  { %3560 = vmatpush3.msra.mxu0 %v4134_v51 }
0x1040   :  { %3561 = vmatprep.subr.mxu0 %v3912_v2 }
0x1041   :  { %3562 = vmatpush3.msra.mxu0 %v4143_v55 }
0x1042   :  { %3563 = vmatprep.subr.mxu0 %v3912_v2 }
0x1043   :  { %3564 = vmatpush3.msra.mxu0 %v4157_v57 }
0x1044   :  { %3598 = vmatprep.subr.mxu0 %v3912_v2 }
0x1045   :  { %v1424_v59 = vpop.permute.xlu1 %1423 }
0x1046   :  { %v1426_v60 = vsel %vm62_vm1, %v1323_v58, %v1424_v59 }
0x1047   :  { %3566 = vmatmul.mubr.msk.f32.vlgmr.msra.gmra.mxu0 %vm411_vm2, %v1426_v60 }
0x1048   :  { %3599 = vmatpush3.msra.mxu0 %v4079_v33  ;;  %3614 = vmatprep.mubr.msk.f32.mxu0 %vm3913_vm0, %v3912_v2  ;;  %v4462_v33 = vld [vmem:[%s4783_s3] ss:$0 sm:$0xff] }
0x1049   :  { %3600 = vmatprep.subr.mxu0 %v3912_v2  ;;  %v189_v42 = vadd.f32 %v4462_v33, %v4201_v5 }
0x104a   :  { %3601 = vmatpush3.msra.mxu0 %v4086_v35  ;;  %v184_v35 = vadd.f32 %v4462_v33, %v4203_v6 }
0x104b   :  { %3602 = vmatprep.subr.mxu0 %v3912_v2 }
0x104c   :  { %3603 = vmatpush3.msra.mxu0 %v4098_v39 }
0x104d   :  { %3604 = vmatprep.subr.mxu0 %v3912_v2 }
0x104e   :  { %3605 = vmatpush3.msra.mxu0 %v4110_v43 }
0x104f   :  { %3606 = vmatprep.subr.mxu0 %v3912_v2 }
0x1050   :  { %3607 = vmatpush3.msra.mxu0 %v4122_v47 }
0x1051   :  { %3608 = vmatprep.subr.mxu0 %v3912_v2 }
0x1052   :  { %3609 = vmatpush3.msra.mxu0 %v4134_v51 }
0x1053   :  { %3610 = vmatprep.subr.mxu0 %v3912_v2 }
0x1054   :  { %3611 = vmatpush3.msra.mxu0 %v4143_v55 }
0x1055   :  { %3612 = vmatprep.subr.mxu0 %v3912_v2 }
0x1056   :  { %3613 = vmatpush3.msra.mxu0 %v4157_v57 }
0x1057   :  { %3628 = vmatprep.subr.bf16.mxu0 %v3912_v2 }
0x10f4   :  { %v1392_v39 = vpop.f32.mrf.mxu0 }
0x10f5   :  { %v1396_v43 = vadd.f32 %v1392_v39, %v184_v35 }
0x10f6   :  { %v3548_v47 = vpop.f32.mrf.mxu0 }
0x10f7   :  { %3845 = vtanh.f32 %v1396_v43  ;;  %v3149_v9 = vmul.f32 -1.442695, %v1396_v43 }
0x1104   :  { %v3846_v51 = vpop.eup %3845 }
0x1105   :  { %1406 = vrot.lane.b32.xlu0 %v3846_v51, %s3914_s17 }
0x1107   :  { %v1496_v55 = vpop.f32.mrf.mxu0 }
0x1108   :  { %v1497_v62 = vadd.f32 %v4210_v8, %v1496_v55 }
0x1109   :  { %v3567_v61 = vpop.f32.mrf.mxu0 }
0x110a   :  { %3847 = vtanh.f32 %v1497_v62  ;;  %v3151_v6 = vmul.f32 -1.442695, %v1497_v62 }
0x110b   :  { %3849 = vpow2.f32 %v3149_v9 }
0x1117   :  { %v3848_v7 = vpop.eup %3847 }
0x1118   :  { %1509 = vrot.lane.b32.xlu1 %v3848_v7, %s3914_s17  ;;  %v3850_v11 = vpop.eup %3849 }
0x1119   :  { %v1400_v12 = vadd.f32 1.0, %v3850_v11 }
0x111b   :  { %3851 = vrcp.f32 %v1400_v12 }
0x111c   :  { %3853 = vpow2.f32 %v3151_v6 }
0x1128   :  { %v3852_v15 = vpop.eup %3851 }
0x1129   :  { %v3854_v63 = vpop.eup %3853  ;;  %v1404_v22 = vmul.f32 %v3852_v15, %v4409_v45 }
0x112a   :  { %v1503_v19 = vadd.f32 1.0, %v3854_v63 }
0x112c   :  { %3855 = vrcp.f32 %v1503_v19 }
0x1139   :  { %v3856_v20 = vpop.eup %3855 }
0x113a   :  { %v1507_v25 = vmul.f32 %v3856_v20, %v4414_v1 }
0x1177   :  { %v1407_v17 = vpop.permute.xlu0 %1406 }
0x1178   :  { %v1409_v18 = vmul.f32 %v3852_v15, %v1407_v17 }
0x117a   :  { %1411 = vrot.lane.b32.xlu0 %v1409_v18, %s3915_s18 }
0x118a   :  { %v1510_v14 = vpop.permute.xlu1 %1509 }
0x118b   :  { %v1512_v21 = vmul.f32 %v3856_v20, %v1510_v14 }
0x118d   :  { %1514 = vrot.lane.b32.xlu1 %v1512_v21, %s3915_s18 }
0x11ec   :  { %v1412_v3 = vpop.permute.xlu0 %1411 }
0x11ed   :  { %v4472_v23 = vadd.f32 %v1412_v3, %v1404_v22 }
0x11ef   :  { %3857 = vtanh.f32 %v4472_v23 }
0x11fc   :  { %v3858_v24 = vpop.eup %3857 }
0x11fd   :  { %1417 = vrot.lane.b32.xlu0 %v3858_v24, %s3914_s17 }
0x11ff   :  { %v1515_v26 = vpop.permute.xlu1 %1514 }
0x1200   :  { %v4477_v4 = vadd.f32 %v1515_v26, %v1507_v25 }
0x1202   :  { %3859 = vtanh.f32 %v4477_v4 }
0x120f   :  { %v3860_v27 = vpop.eup %3859 }
0x1210   :  { %1520 = vrot.lane.b32.xlu1 %v3860_v27, %s3914_s17  ;;  %v3745_v27 = vld [vmem:[%s4786_s10 + $0x8] sm:$0xff]  }
0x126f   :  { %v1418_v10 = vpop.permute.xlu0 %1417 }
0x1270   :  { %v1420_v28 = vmul.f32 %v3852_v15, %v1418_v10  ;;  %v1952_v10 = vmul.f32 0.125, %v4146_v56  ;;  %v1836_v56 = vld [vmem:[%s4787_s6 + $0x18] sm:$0xff] }
0x1272   :  { %1525 = vrot.lane.b32.xlu0 %v1420_v28, %s3915_s18  ;;  %v3746_v28 = vld [vmem:[%s4786_s10] sm:$0xff]  }
0x1282   :  { %v1521_v13 = vpop.permute.xlu1 %1520 }
0x1283   :  { %v1523_v29 = vmul.f32 %v3856_v20, %v1521_v13  ;;  %v3911_v20 = vld [vmem:[%s4785_s5] ss:$0 sm:$0xff]  ;;  %v1957_v13 = vpack.c.bf16 %v1952_v10, %v1952_v10  ;;  %v4660_v10 = vld [vmem:[%s4789_s8 + $0x38] sm:$0xff]  }
0x1285   :  { %1626 = vrot.lane.b32.xlu1 %v1523_v29, %s3914_s17 }
0x12e4   :  { %v1526_v31 = vpop.permute.xlu0 %1525 }
0x12e5   :  { %3577 = vmatmul.mubr.msk.f32.vlgmr.msra.gmra.mxu1 %vm62_vm1, %v1526_v31 }
0x12e6   :  { %3580 = vmatpush3.msra.mxu1 %v3904_v16  ;;  %3595 = vmatprep.mubr.msk.f32.mxu1 %vm3913_vm0, %v3912_v2 }
0x12e7   :  { %3581 = vmatprep.subr.mxu1 %v3912_v2 }
0x12e8   :  { %3582 = vmatpush3.msra.mxu1 %v3905_v0  ;;  %v1835_v0 = vld [vmem:[%s4787_s6 + $0x10] sm:$0xff] }
0x12e9   :  { %3583 = vmatprep.subr.mxu1 %v3912_v2 }
0x12ea   :  { %3584 = vmatpush3.msra.mxu1 %v3906_v32  ;;  %v1834_v32 = vld [vmem:[%s4787_s6 + $0x8] sm:$0xff] }
0x12eb   :  { %3585 = vmatprep.subr.mxu1 %v3912_v2 }
0x12ec   :  { %3586 = vmatpush3.msra.mxu1 %v3907_v34  ;;  %v1833_v34 = vld [vmem:[%s4787_s6] sm:$0xff] }
0x12ed   :  { %3587 = vmatprep.subr.mxu1 %v3912_v2 }
0x12ee   :  { %3588 = vmatpush3.msra.mxu1 %v3908_v36 }
0x12ef   :  { %3589 = vmatprep.subr.mxu1 %v3912_v2 }
0x12f0   :  { %3590 = vmatpush3.msra.mxu1 %v3909_v37 }
0x12f1   :  { %3591 = vmatprep.subr.mxu1 %v3912_v2 }
0x12f2   :  { %3592 = vmatpush3.msra.mxu1 %v3910_v38 }
0x12f3   :  { %3593 = vmatprep.subr.mxu1 %v3912_v2 }
0x12f4   :  { %3594 = vmatpush3.msra.mxu1 %v4157_v57 }
0x12f5   :  { %3617 = vmatprep.subr.mxu1 %v3912_v2 }
0x12f7   :  { %v1627_v40 = vpop.permute.xlu1 %1626 }
0x12f8   :  { %v1629_v41 = vsel %vm62_vm1, %v1526_v31, %v1627_v40 }
0x12f9   :  { %3596 = vmatmul.mubr.msk.f32.vlgmr.msra.gmra.mxu1 %vm411_vm2, %v1629_v41 }
0x12fa   :  { %3625 = vmatprep.mubr.msk.f32.mxu1 %vm3913_vm0, %v3912_v2  ;;  %3618 = vmatpush3.msra.mxu1 %v1836_v56 }
0x12fb   :  { %3619 = vmatprep.subr.mxu1 %v3912_v2 }
0x12fc   :  { %3620 = vmatpush3.msra.mxu1 %v1835_v0 }
0x12fd   :  { %3621 = vmatprep.subr.mxu1 %v3912_v2 }
0x12fe   :  { %3622 = vmatpush3.msra.mxu1 %v1834_v32 }
0x12ff   :  { %3623 = vmatprep.subr.mxu1 %v3912_v2 }
0x1300   :  { %3624 = vmatpush3.msra.mxu1 %v1833_v34 }
0x1301   :  { %3636 = vmatprep.subr.bf16.mxu1 %v3912_v2 }
0x13a5   :  { %v1595_v44 = vpop.f32.mrf.mxu1 }
0x13a6   :  { %v1599_v45 = vadd.f32 %v1595_v44, %v189_v42 }
0x13a7   :  { %v3578_v46 = vpop.f32.mrf.mxu1 }
0x13a8   :  { %3861 = vtanh.f32 %v1599_v45  ;;  %v3153_v50 = vmul.f32 -1.442695, %v1599_v45  ;;  %v3747_v45 = vld [vmem:[%s4788_s9 + $0x8] sm:$0xff]  }
0x13b5   :  { %v3862_v30 = vpop.eup %3861 }
0x13b6   :  { %1609 = vrot.lane.b32.xlu0 %v3862_v30, %s3914_s17  ;;  %v3748_v30 = vld [vmem:[%s4788_s9] sm:$0xff]  }
0x13b9   :  { %v1699_v57 = vpop.f32.mrf.mxu1 }
0x13ba   :  { %v1700_v48 = vadd.f32 %v4210_v8, %v1699_v57 }
0x13bb   :  { %v3597_v1 = vpop.f32.mrf.mxu1 }
0x13bc   :  { %3863 = vtanh.f32 %v1700_v48  ;;  %v3155_v5 = vmul.f32 -1.442695, %v1700_v48  ;;  %v4589_v48 = vld [vmem:[%s4789_s8] sm:$0xff]  }
0x13bd   :  { %3865 = vpow2.f32 %v3153_v50  ;;  %v2148_v1 = vsel %vm411_vm2, %v4589_v48, 0 }
0x13c9   :  { %v3864_v49 = vpop.eup %3863 }
0x13ca   :  { %1712 = vrot.lane.b32.xlu1 %v3864_v49, %s3914_s17  ;;  %v3866_v52 = vpop.eup %3865  ;;  %v4596_v49 = vld [vmem:[%s4789_s8 + $0x8] sm:$0xff]  }
0x13cb   :  { %v1603_v53 = vadd.f32 1.0, %v3866_v52  ;;  %v2199_v50 = vsel %vm411_vm2, %v4596_v49, 0  ;;  %v3916_v52 = vmov 1966171168  }
0x13cd   :  { %3867 = vrcp.f32 %v1603_v53  ;;  %v2076_v53 = vunpack.c.l.s4 %v3916_v52 }
0x13ce   :  { %3869 = vpow2.f32 %v3155_v5  ;;  %v2078_v5 = vlaneseq }
0x13da   :  { %v3868_v54 = vpop.eup %3867 }
0x13db   :  { %v3870_v59 = vpop.eup %3869  ;;  %v1607_v43 = vmul.f32 %v3868_v54, %v4472_v23 }
0x13dc   :  { %v1706_v33 = vadd.f32 1.0, %v3870_v59 }
0x13de   :  { %3871 = vrcp.f32 %v1706_v33  ;;  %v2079_v33 = vshrl.u32 %v2078_v5, 7 }
0x13eb   :  { %v3872_v8 = vpop.eup %3871 }
0x13ec   :  { %v1710_v62 = vmul.f32 %v3872_v8, %v4477_v4 }
0x1428   :  { %v1610_v58 = vpop.permute.xlu0 %1609 }
0x1429   :  { %v1612_v60 = vmul.f32 %v3868_v54, %v1610_v58 }
0x142b   :  { %1614 = vrot.lane.b32.xlu0 %v1612_v60, %s3915_s18  ;;  %v2077_v60 = vunpack.c.0.s8 %v2076_v53 }
0x143c   :  { %v1713_v35 = vpop.permute.xlu1 %1712 }
0x143d   :  { %v1715_v39 = vmul.f32 %v3872_v8, %v1713_v35  ;;  %v2080_v35 = vsub.s32 %v2077_v60, %v2079_v33 }
0x143f   :  { %1717 = vrot.lane.b32.xlu1 %v1715_v39, %s3915_s18 }
0x149d   :  { %v1615_v47 = vpop.permute.xlu0 %1614 }
0x149e   :  { %v1617_v51 = vadd.f32 %v1615_v47, %v1607_v43 }
0x14a0   :  { %3873 = vtanh.f32 %v1617_v51  ;;  %v4611_v51 = vld [vmem:[%s4789_s8 + $0x10] sm:$0xff]  }
0x14ad   :  { %v3874_v55 = vpop.eup %3873 }
0x14ae   :  { %1620 = vrot.lane.b32.xlu0 %v3874_v55, %s3914_s17 }
0x14b1   :  { %v1718_v61 = vpop.permute.xlu1 %1717 }
0x14b2   :  { %v1720_v7 = vadd.f32 %v1718_v61, %v1710_v62 }
0x14b4   :  { %3875 = vtanh.f32 %v1720_v7 }
0x14c1   :  { %v3876_v9 = vpop.eup %3875 }
0x14c2   :  { %1723 = vrot.lane.b32.xlu1 %v3876_v9, %s3914_s17 }
0x1520   :  { %v1621_v11 = vpop.permute.xlu0 %1620 }
0x1521   :  { %v1623_v12 = vmul.f32 %v3868_v54, %v1621_v11  ;;  %v3158_v54 = vld [vmem:[%s4790_s7] ss:$0 sm:$0xff] }
0x1523   :  { %1728 = vrot.lane.b32.xlu0 %v1623_v12, %s3915_s18 }
0x1534   :  { %v1724_v6 = vpop.permute.xlu1 %1723 }
0x1535   :  { %v1726_v15 = vmul.f32 %v3872_v8, %v1724_v6  ;;  %v2250_v6 = vsel %vm411_vm2, %v4611_v51, 0 }
0x1537   :  { %1732 = vrot.lane.b32.xlu1 %v1726_v15, %s3914_s17 }
0x1595   :  { %v1729_v63 = vpop.permute.xlu0 %1728 }
0x15a9   :  { %v1733_v17 = vpop.permute.xlu1 %1732 }
0x15aa   :  { %v1735_v18 = vsel %vm62_vm1, %v1729_v63, %v1733_v17 }
0x15ab   :  { %3615 = vmatmul.mubr.msk.f32.vlgmr.msra.gmra.mxu0 %vm411_vm2, %v1735_v18 }
0x15ac   :  { %3632 = vmatprep.mubr.msk.bf16.mxu0 %vm3913_vm0, %v3912_v2  ;;  %3629 = vmatpush3.bf16.msra.mxu0 %v3745_v27 }
0x15ad   :  { %3630 = vmatprep.subr.bf16.mxu0 %v3912_v2 }
0x15b0   :  { %3631 = vmatpush3.bf16.msra.mxu0 %v3746_v28 }
0x15b1   :  { %3644 = vmatprep.subr.bf16.mxu0 %v3912_v2 }
0x15b3   :  { %3633 = vmatmul.mubr.msk.bf16.vlgmr.msra.gmra.mxu0 %vm62_vm1, %v1957_v13 }
0x15b4   :  { %3646 = vmatprep.mubr.msk.bf16.mxu0 %vm3913_vm0, %v3912_v2  ;;  %3645 = vmatpush3.bf16.xpose.msra.mxu0 %v2148_v1 }
0x15b5   :  { %3656 = vmatprep.subr.bf16.mxu0 %v3912_v2 }
0x166b   :  { %v1805_v19 = vpop.f32.mrf.mxu0 }
0x166c   :  { %v1806_v14 = vadd.f32 %v3911_v20, %v1805_v19  ;;  %v4629_v19 = vld [vmem:[%s4789_s8 + $0x20] sm:$0xff]  }
0x166d   :  { %v3616_v21 = vpop.f32.mrf.mxu0 }
0x166e   :  { %3877 = vtanh.f32 %v1806_v14  ;;  %v3157_v3 = vmul.f32 -1.442695, %v1806_v14  ;;  %v4638_v21 = vld [vmem:[%s4789_s8 + $0x28] sm:$0xff]  }
0x1670   :  { %3879 = vpow2.f32 %v3157_v3  ;;  %v2352_v3 = vsel %vm411_vm2, %v4629_v19, 0 }
0x1673   :  { %v2007_v37 = vpop.f32.mrf.mxu0 }
0x1674   :  { %v2017_v57 = vpack.c.bf16 %v2007_v37, %v2007_v37 }
0x1675   :  { %v3634_v38 = vpop.f32.mrf.mxu0 }
0x1677   :  { %v2010_v40 = vpop.f32.mrf.mxu0 }
0x1679   :  { %v3635_v41 = vpop.f32.mrf.mxu0 }
0x167b   :  { %v3878_v22 = vpop.eup %3877 }
0x167c   :  { %1818 = vrot.lane.b32.xlu0 %v3878_v22, %s3914_s17 }
0x167d   :  { %v3880_v23 = vpop.eup %3879 }
0x167e   :  { %v1812_v24 = vadd.f32 1.0, %v3880_v23 }
0x1680   :  { %3881 = vrcp.f32 %v1812_v24 }
0x168d   :  { %v3882_v25 = vpop.eup %3881 }
0x168e   :  { %v1816_v29 = vmul.f32 %v3882_v25, %v1720_v7  ;;  %v4616_v7 = vld [vmem:[%s4789_s8 + $0x18] sm:$0xff]  }
0x168f   :  { %v2301_v17 = vsel %vm411_vm2, %v4616_v7, 0 }
0x16ee   :  { %v1819_v26 = vpop.permute.xlu0 %1818 }
0x16ef   :  { %v1821_v4 = vmul.f32 %v3882_v25, %v1819_v26 }
0x16f1   :  { %1823 = vrot.lane.b32.xlu1 %v1821_v4, %s3915_s18  ;;  %v4652_v4 = vld [vmem:[%s4789_s8 + $0x30] sm:$0xff]  }
0x16f2   :  { %v2454_v13 = vsel %vm411_vm2, %v4652_v4, 0 }
0x1763   :  { %v1824_v31 = vpop.permute.xlu1 %1823 }
0x1764   :  { %v1826_v16 = vadd.f32 %v1824_v31, %v1816_v29  ;;  %v2505_v31 = vsel %vm411_vm2, %v4660_v10, 0 }
0x1766   :  { %3883 = vtanh.f32 %v1826_v16 }
0x1773   :  { %v3884_v36 = vpop.eup %3883 }
0x1774   :  { %1829 = vrot.lane.b32.xlu0 %v3884_v36, %s3914_s17 }
0x17e6   :  { %v1830_v42 = vpop.permute.xlu0 %1829 }
0x17e7   :  { %v1832_v44 = vmul.f32 %v3882_v25, %v1830_v42  ;;  %v2403_v25 = vsel %vm411_vm2, %v4638_v21, 0 }
0x17e9   :  { %1845 = vrot.lane.b32.xlu1 %v1832_v44, %s3915_s18 }
0x185b   :  { %v1846_v46 = vpop.permute.xlu1 %1845 }
0x185c   :  { %3626 = vmatmul.mubr.msk.f32.vlgmr.msra.gmra.mxu1 %vm62_vm1, %v1846_v46 }
0x185d   :  { %3637 = vmatpush3.bf16.msra.mxu1 %v3747_v45  ;;  %3640 = vmatprep.mubr.msk.bf16.mxu1 %vm3913_vm0, %v3912_v2 }
0x185e   :  { %3638 = vmatprep.subr.bf16.mxu1 %v3912_v2 }
0x1861   :  { %3639 = vmatpush3.bf16.msra.mxu1 %v3748_v30 }
0x1862   :  { %3650 = vmatprep.subr.bf16.mxu1 %v3912_v2 }
0x1864   :  { %3641 = vmatmul.mubr.msk.bf16.vlgmr.msra.gmra.mxu1 %vm62_vm1, %v2017_v57 }
0x1865   :  { %3652 = vmatprep.mubr.msk.bf16.mxu1 %vm3913_vm0, %v3912_v2  ;;  %3651 = vmatpush3.bf16.xpose.msra.mxu1 %v2199_v50 }
0x1866   :  { %3662 = vmatprep.subr.bf16.mxu1 %v3912_v2 }
0x191c   :  { %v1915_v58 = vpop.f32.mrf.mxu1 }
0x191d   :  { %v1916_v59 = vadd.f32 %v3158_v54, %v1915_v58 }
0x191e   :  { %v3627_v8 = vpop.f32.mrf.mxu1 }
0x191f   :  { %1919 = vst [vmem:[%s4791_s11] sm:$0xff] %v1916_v59 }
0x1924   :  { %v2067_v39 = vpop.f32.mrf.mxu1 }
0x1925   :  { %v2081_v43 = vrot.slane %v2067_v39, %v2080_v35  ;;  %v2074_v63 = vcombine.high %v2067_v39, %v2067_v39 }
0x1926   :  { %v3642_v47 = vpop.f32.mrf.mxu1 }
0x1927   :  { %v2089_v55 = vcombine.high %v2081_v43, %v2081_v43  ;;  %v2097_v62 = vrot.slane %v2081_v43, %v2080_v35  ;;  %v2088_v20 = vrot.slane %v2074_v63, %v2080_v35 }
0x1928   :  { %v2070_v61 = vpop.f32.mrf.mxu1 }
0x1929   :  { %v2111_v9 = vrot.slane %v2089_v55, %v2080_v35  ;;  %v2131_v11 = vpack.c.bf16 %v2097_v62, %v2097_v62  ;;  %v2119_v18 = vcombine.high %v2097_v62, %v2097_v62  ;;  %v2090_v23 = vcombine.high %v2088_v20, %v2088_v20 }
0x192a   :  { %v3643_v12 = vpop.f32.mrf.mxu1  ;;  %v2104_v26 = vrot.slane %v2088_v20, %v2080_v35 }
0x192b   :  { %v2132_v15 = vpack.c.bf16 %v2111_v9, %v2111_v9  ;;  %3647 = vmatmul.mubr.msk.bf16.vlgmr.msra.gmra.mxu0 %vm411_vm2, %v2131_v11  ;;  %v2121_v14 = vcombine.high %v2111_v9, %v2111_v9  ;;  %v2133_v22 = vpack.c.bf16 %v2119_v18, %v2119_v18  ;;  %v2118_v27 = vrot.slane %v2090_v23, %v2080_v35 }
0x192c   :  { %3657 = vmatpush3.bf16.xpose.msra.mxu0 %v2250_v6  ;;  %3658 = vmatprep.mubr.msk.bf16.mxu0 %vm3913_vm0, %v3912_v2  ;;  %v2135_v28 = vpack.c.bf16 %v2104_v26, %v2104_v26  ;;  %v2120_v16 = vcombine.high %v2104_v26, %v2104_v26 }
0x192d   :  { %3653 = vmatmul.mubr.msk.bf16.vlgmr.msra.gmra.mxu1 %vm411_vm2, %v2132_v15  ;;  %3668 = vmatprep.subr.bf16.mxu0 %v3912_v2  ;;  %v2134_v24 = vpack.c.bf16 %v2121_v14, %v2121_v14  ;;  %v2136_v29 = vpack.c.bf16 %v2118_v27, %v2118_v27  ;;  %v2122_v56 = vcombine.high %v2118_v27, %v2118_v27 }
0x192e   :  { %3663 = vmatpush3.bf16.xpose.msra.mxu1 %v2301_v17  ;;  %3664 = vmatprep.mubr.msk.bf16.mxu1 %vm3913_vm0, %v3912_v2  ;;  %v2137_v0 = vpack.c.bf16 %v2120_v16, %v2120_v16 }
0x192f   :  { %3674 = vmatprep.subr.bf16.mxu1 %v3912_v2  ;;  %v2138_v32 = vpack.c.bf16 %v2122_v56, %v2122_v56 }
0x1933   :  { %3659 = vmatmul.mubr.msk.bf16.vlgmr.msra.gmra.mxu0 %vm411_vm2, %v2133_v22 }
0x1934   :  { %3669 = vmatpush3.bf16.xpose.msra.mxu0 %v2352_v3  ;;  %3670 = vmatprep.mubr.msk.bf16.mxu0 %vm3913_vm0, %v3912_v2 }
0x1935   :  { %3665 = vmatmul.mubr.msk.bf16.vlgmr.msra.gmra.mxu1 %vm411_vm2, %v2134_v24  ;;  %3680 = vmatprep.subr.bf16.mxu0 %v3912_v2 }
0x1936   :  { %3675 = vmatpush3.bf16.xpose.msra.mxu1 %v2403_v25  ;;  %3676 = vmatprep.mubr.msk.bf16.mxu1 %vm3913_vm0, %v3912_v2 }
0x1937   :  { %3686 = vmatprep.subr.bf16.mxu1 %v3912_v2 }
0x193b   :  { %3671 = vmatmul.mubr.msk.bf16.vlgmr.msra.gmra.mxu0 %vm411_vm2, %v2135_v28 }
0x193c   :  { %3681 = vmatpush3.bf16.xpose.msra.mxu0 %v2454_v13  ;;  %3682 = vmatprep.mubr.msk.bf16.mxu0 %vm3913_vm0, %v3912_v2 }
0x193d   :  { %3677 = vmatmul.mubr.msk.bf16.vlgmr.msra.gmra.mxu1 %vm411_vm2, %v2136_v29  ;;  %3692 = vmatprep.subr.bf16.mxu0 %v3912_v2 }
0x193e   :  { %3687 = vmatpush3.bf16.xpose.msra.mxu1 %v2505_v31  ;;  %3688 = vmatprep.mubr.msk.bf16.mxu1 %vm3913_vm0, %v3912_v2 }
0x193f   :  { %3698 = vmatprep.subr.bf16.mxu1 %v3912_v2 }
0x1943   :  { %3683 = vmatmul.mubr.msk.bf16.vlgmr.msra.gmra.mxu0 %vm411_vm2, %v2137_v0 }
0x1944   :  { %3693 = vmatpush3.bf16.msra.mxu0 %v4589_v48  ;;  %3694 = vmatprep.mubr.msk.bf16.mxu0 %vm3913_vm0, %v3912_v2 }
0x1945   :  { %3689 = vmatmul.mubr.msk.bf16.vlgmr.msra.gmra.mxu1 %vm411_vm2, %v2138_v32  ;;  %3704 = vmatprep.subr.bf16.mxu0 %v3912_v2 }
0x1946   :  { %3699 = vmatpush3.bf16.msra.mxu1 %v4596_v49  ;;  %3700 = vmatprep.mubr.msk.bf16.mxu1 %vm3913_vm0, %v3912_v2 }
0x1947   :  { %3710 = vmatprep.subr.bf16.mxu1 %v3912_v2 }
0x19eb   :  { %v4684_v34 = vpop.f32.mrf.mxu0 }
0x19ed   :  { %v3648_v36 = vpop.f32.mrf.mxu0  ;;  %v4686_v37 = vpop.f32.mrf.mxu1 }
0x19ee   :  { %v2555_v1 = vrot.slane %v4686_v37, 7 }
0x19ef   :  { %v2187_v38 = vpop.f32.mrf.mxu0  ;;  %v3654_v40 = vpop.f32.mrf.mxu1 }
0x19f0   :  { %v2557_v54 = vsel %vm2556_vm3, %v2555_v1, %v4684_v34 }
0x19f1   :  { %v3649_v41 = vpop.f32.mrf.mxu0  ;;  %v2238_v42 = vpop.f32.mrf.mxu1 }
0x19f3   :  { %v3655_v44 = vpop.f32.mrf.mxu1  ;;  %v2286_v45 = vpop.f32.mrf.mxu0 }
0x19f4   :  { %v2558_v52 = vrot.slane %v2286_v45, 6 }
0x19f5   :  { %v3660_v46 = vpop.f32.mrf.mxu0  ;;  %v2337_v30 = vpop.f32.mrf.mxu1 }
0x19f6   :  { %v2561_v58 = vrot.slane %v2337_v30, 5  ;;  %v2560_v33 = vsel %vm2559_vm4, %v2558_v52, %v2557_v54 }
0x19f7   :  { %v2289_v57 = vpop.f32.mrf.mxu0  ;;  %v3666_v48 = vpop.f32.mrf.mxu1 }
0x19f8   :  { %v2563_v43 = vsel %vm2562_vm5, %v2561_v58, %v2560_v33 }
0x19f9   :  { %v3661_v49 = vpop.f32.mrf.mxu0  ;;  %v2340_v50 = vpop.f32.mrf.mxu1 }
0x19fb   :  { %v3667_v53 = vpop.f32.mrf.mxu1  ;;  %v2388_v5 = vpop.f32.mrf.mxu0 }
0x19fc   :  { %v2564_v8 = vrot.slane %v2388_v5, 4 }
0x19fd   :  { %v3672_v59 = vpop.f32.mrf.mxu0  ;;  %v2439_v60 = vpop.f32.mrf.mxu1 }
0x19fe   :  { %v2567_v47 = vrot.slane %v2439_v60, 3  ;;  %v2566_v61 = vsel %vm2565_vm6, %v2564_v8, %v2563_v43 }
0x19ff   :  { %v2391_v35 = vpop.f32.mrf.mxu0  ;;  %v3678_v39 = vpop.f32.mrf.mxu1 }
0x1a00   :  { %v2569_v63 = vsel %vm2568_vm7, %v2567_v47, %v2566_v61 }
0x1a01   :  { %v3673_v55 = vpop.f32.mrf.mxu0  ;;  %v2442_v62 = vpop.f32.mrf.mxu1 }
0x1a03   :  { %v3679_v9 = vpop.f32.mrf.mxu1  ;;  %v2490_v11 = vpop.f32.mrf.mxu0 }
0x1a04   :  { %v2570_v12 = vrot.slane %v2490_v11, 2 }
0x1a05   :  { %v3684_v6 = vpop.f32.mrf.mxu0  ;;  %v2541_v15 = vpop.f32.mrf.mxu1 }
0x1a06   :  { %v2573_v17 = vrot.slane %v2541_v15, 1  ;;  %v2572_v18 = vsel %vm2571_vm8, %v2570_v12, %v2569_v63 }
0x1a07   :  { %v2493_v20 = vpop.f32.mrf.mxu0  ;;  %v3690_v14 = vpop.f32.mrf.mxu1 }
0x1a08   :  { %v2575_v22 = vsel %vm2574_vm9, %v2573_v17, %v2572_v18 }
0x1a09   :  { %v3685_v3 = vpop.f32.mrf.mxu0  ;;  %v2544_v23 = vpop.f32.mrf.mxu1  ;;  %v2578_v24 = vsel %vm2577_vm10, %v2575_v22, -inf }
0x1a0a   :  { %2579 = vmax.xlane.f32.xlu0 %v2578_v24 }
0x1a0b   :  { %v3691_v25 = vpop.f32.mrf.mxu1 }
0x1a93   :  { %v2580_v26 = vpop.xlane.xlu0 %2579 }
0x1a94   :  { %v2582_v27 = vrot.slane %v2580_v26, 1  ;;  %v2583_v28 = vrot.slane %v2580_v26, 2  ;;  %v2584_v13 = vrot.slane %v2580_v26, 3  ;;  %v2585_v29 = vrot.slane %v2580_v26, 4 }
0x1a95   :  { %v2586_v31 = vrot.slane %v2580_v26, 5  ;;  %v2587_v16 = vrot.slane %v2580_v26, 6  ;;  %v2588_v56 = vrot.slane %v2580_v26, 7  ;;  %v2597_v0 = vsub.f32 %v4684_v34, %v2580_v26 }
0x1a96   :  { %v2598_v32 = vsub.f32 %v4686_v37, %v2582_v27  ;;  %v2599_v36 = vsub.f32 %v2286_v45, %v2583_v28  ;;  %v2600_v38 = vsub.f32 %v2337_v30, %v2584_v13  ;;  %v2601_v40 = vsub.f32 %v2388_v5, %v2585_v29 }
0x1a97   :  { %v2602_v41 = vsub.f32 %v2439_v60, %v2586_v31  ;;  %v2603_v42 = vsub.f32 %v2490_v11, %v2587_v16  ;;  %v2605_v44 = vmul.f32 1.442695, %v2597_v0  ;;  %v2604_v46 = vsub.f32 %v2541_v15, %v2588_v56 }
0x1a98   :  { %v2607_v57 = vmul.f32 1.442695, %v2598_v32  ;;  %v2609_v48 = vmul.f32 1.442695, %v2599_v36  ;;  %v2611_v1 = vmul.f32 1.442695, %v2600_v38 }
0x1a99   :  { %3885 = vpow2.f32 %v2605_v44  ;;  %v2613_v49 = vmul.f32 1.442695, %v2601_v40  ;;  %v2615_v50 = vmul.f32 1.442695, %v2602_v41  ;;  %v2617_v52 = vmul.f32 1.442695, %v2603_v42 }
0x1a9a   :  { %3887 = vpow2.f32 %v2607_v57  ;;  %v2619_v34 = vmul.f32 1.442695, %v2604_v46 }
0x1a9b   :  { %3889 = vpow2.f32 %v2609_v48 }
0x1a9c   :  { %3891 = vpow2.f32 %v2611_v1 }
0x1a9d   :  { %3893 = vpow2.f32 %v2613_v49 }
0x1a9e   :  { %3895 = vpow2.f32 %v2615_v50 }
0x1a9f   :  { %3897 = vpow2.f32 %v2617_v52 }
0x1aa0   :  { %3899 = vpow2.f32 %v2619_v34 }
0x1aa6   :  { %v3886_v37 = vpop.eup %3885 }
0x1aa7   :  { %v3888_v45 = vpop.eup %3887 }
0x1aa8   :  { %v3890_v30 = vpop.eup %3889  ;;  %v2629_v53 = vrot.slane %v3888_v45, 7 }
0x1aa9   :  { %v3892_v5 = vpop.eup %3891  ;;  %v2631_v54 = vrot.slane %v3890_v30, 6 }
0x1aaa   :  { %v3894_v58 = vpop.eup %3893  ;;  %v2630_v59 = vsel %vm2556_vm3, %v2629_v53, %v3886_v37  ;;  %v2633_v60 = vrot.slane %v3892_v5, 5 }
0x1aab   :  { %v3896_v33 = vpop.eup %3895  ;;  %v2632_v8 = vsel %vm2559_vm4, %v2631_v54, %v2630_v59  ;;  %v2635_v35 = vrot.slane %v3894_v58, 4 }
0x1aac   :  { %v3898_v39 = vpop.eup %3897  ;;  %v2634_v43 = vsel %vm2562_vm5, %v2633_v60, %v2632_v8  ;;  %v2637_v47 = vrot.slane %v3896_v33, 3 }
0x1aad   :  { %v3900_v55 = vpop.eup %3899  ;;  %v2636_v62 = vsel %vm2565_vm6, %v2635_v35, %v2634_v43  ;;  %v2639_v61 = vrot.slane %v3898_v39, 2 }
0x1aae   :  { %v2638_v9 = vsel %vm2568_vm7, %v2637_v47, %v2636_v62  ;;  %v2641_v11 = vrot.slane %v3900_v55, 1 }
0x1aaf   :  { %v2640_v12 = vsel %vm2571_vm8, %v2639_v61, %v2638_v9 }
0x1ab0   :  { %v2642_v6 = vsel %vm2574_vm9, %v2641_v11, %v2640_v12 }
0x1ab1   :  { %v2644_v15 = vsel %vm2577_vm10, %v2642_v6, 0.0 }
0x1ab2   :  { %2645 = vadd.xlane.f32.xlu1 %v2644_v15 }
0x1b3b   :  { %v2646_v63 = vpop.xlane.xlu1 %2645 }
0x1b3c   :  { %3901 = vrcp.f32 %v2646_v63 }
0x1b49   :  { %v3902_v17 = vpop.eup %3901 }
0x1b4a   :  { %v2664_v18 = vmul.f32 %v3902_v17, %v3886_v37  ;;  %v2649_v20 = vrot.slane %v3902_v17, 1  ;;  %v2650_v14 = vrot.slane %v3902_v17, 2  ;;  %v2651_v22 = vrot.slane %v3902_v17, 3 }
0x1b4b   :  { %v2652_v3 = vrot.slane %v3902_v17, 4  ;;  %v2653_v23 = vrot.slane %v3902_v17, 5  ;;  %v2654_v24 = vrot.slane %v3902_v17, 6  ;;  %v2655_v38 = vrot.slane %v3902_v17, 7 }
0x1b4c   :  { %v2697_v25 = vsel %vm2696_vm11, %v2664_v18, 0.0625  ;;  %v2665_v26 = vmul.f32 %v3888_v45, %v2649_v20  ;;  %v2666_v27 = vmul.f32 %v3890_v30, %v2650_v14  ;;  %v2667_v28 = vmul.f32 %v3892_v5, %v2651_v22 }
0x1b4d   :  { %v2705_v13 = vpack.c.bf16 %v2697_v25, %v2697_v25  ;;  %v2668_v29 = vmul.f32 %v3894_v58, %v2652_v3  ;;  %v2669_v0 = vmul.f32 %v3896_v33, %v2653_v23  ;;  %v2670_v36 = vmul.f32 %v3898_v39, %v2654_v24 }
0x1b4e   :  { %v2680_v31 = vrot.slane %v2665_v26, 7  ;;  %v2698_v16 = vsel %vm2696_vm11, %v2665_v26, 0.0625  ;;  %v2682_v56 = vrot.slane %v2666_v27, 6  ;;  %v2684_v41 = vrot.slane %v2667_v28, 5 }
0x1b4f   :  { %3695 = vmatmul.mubr.msk.bf16.vlgmr.msra.gmra.mxu0 %vm2577_vm10, %v2705_v13  ;;  %v2706_v32 = vpack.c.bf16 %v2698_v16, %v2698_v16  ;;  %v2686_v44 = vrot.slane %v2668_v29, 4  ;;  %v2699_v46 = vsel %vm2696_vm11, %v2666_v27, 0.0625  ;;  %v2688_v57 = vrot.slane %v2669_v0, 3 }
0x1b50   :  { %v2681_v40 = vsel %vm2556_vm3, %v2680_v31, %v2664_v18  ;;  %3705 = vmatpush3.bf16.msra.mxu0 %v4611_v51  ;;  %3706 = vmatprep.mubr.msk.bf16.mxu0 %vm3913_vm0, %v3912_v2  ;;  %v2690_v1 = vrot.slane %v2670_v36, 2  ;;  %v2671_v49 = vmul.f32 %v3900_v55, %v2655_v38  ;;  %v2700_v50 = vsel %vm2696_vm11, %v2667_v28, 0.0625 }
0x1b51   :  { %3701 = vmatmul.mubr.msk.bf16.vlgmr.msra.gmra.mxu1 %vm2577_vm10, %v2706_v32  ;;  %v2683_v42 = vsel %vm2559_vm4, %v2682_v56, %v2681_v40  ;;  %3716 = vmatprep.subr.bf16.mxu0 %v3912_v2  ;;  %v2707_v34 = vpack.c.bf16 %v2699_v46, %v2699_v46  ;;  %v2708_v45 = vpack.c.bf16 %v2700_v50, %v2700_v50  ;;  %v2701_v53 = vsel %vm2696_vm11, %v2668_v29, 0.0625 }
0x1b52   :  { %3711 = vmatpush3.bf16.msra.mxu1 %v4616_v7  ;;  %3712 = vmatprep.mubr.msk.bf16.mxu1 %vm3913_vm0, %v3912_v2  ;;  %v2685_v51 = vsel %vm2562_vm5, %v2684_v41, %v2683_v42  ;;  %v2692_v37 = vrot.slane %v2671_v49, 1  ;;  %v2709_v5 = vpack.c.bf16 %v2701_v53, %v2701_v53  ;;  %v2704_v58 = vsel %vm2696_vm11, %v2671_v49, 0.0625 }
0x1b53   :  { %3722 = vmatprep.subr.bf16.mxu1 %v3912_v2  ;;  %v2687_v48 = vsel %vm2565_vm6, %v2686_v44, %v2685_v51  ;;  %v2712_v60 = vpack.c.bf16 %v2704_v58, %v2704_v58 }
0x1b54   :  { %v2689_v52 = vsel %vm2568_vm7, %v2688_v57, %v2687_v48 }
0x1b55   :  { %v2691_v7 = vsel %vm2571_vm8, %v2690_v1, %v2689_v52 }
0x1b56   :  { %v2693_v30 = vsel %vm2574_vm9, %v2692_v37, %v2691_v7 }
0x1b57   :  { %3707 = vmatmul.mubr.msk.bf16.vlgmr.msra.gmra.mxu0 %vm2577_vm10, %v2707_v34  ;;  %2695 = vst.msk [vmem:[%s4792_s12] sm:$0xff] %vm2577_vm10, %v2693_v30 }
0x1b58   :  { %3717 = vmatpush3.bf16.msra.mxu0 %v4629_v19  ;;  %3718 = vmatprep.mubr.msk.bf16.mxu0 %vm3913_vm0, %v3912_v2  ;;  %v2702_v19 = vsel %vm2696_vm11, %v2669_v0, 0.0625 }
0x1b59   :  { %3713 = vmatmul.mubr.msk.bf16.vlgmr.msra.gmra.mxu1 %vm2577_vm10, %v2708_v45  ;;  %3728 = vmatprep.subr.bf16.mxu0 %v3912_v2  ;;  %v2710_v54 = vpack.c.bf16 %v2702_v19, %v2702_v19 }
0x1b5a   :  { %3723 = vmatpush3.bf16.msra.mxu1 %v4638_v21  ;;  %3724 = vmatprep.mubr.msk.bf16.mxu1 %vm3913_vm0, %v3912_v2  ;;  %v2703_v21 = vsel %vm2696_vm11, %v2670_v36, 0.0625 }
0x1b5b   :  { %3734 = vmatprep.subr.bf16.mxu1 %v3912_v2  ;;  %v2711_v59 = vpack.c.bf16 %v2703_v21, %v2703_v21 }
0x1b5f   :  { %3719 = vmatmul.mubr.msk.bf16.vlgmr.msra.gmra.mxu0 %vm2577_vm10, %v2709_v5 }
0x1b60   :  { %3729 = vmatpush3.bf16.msra.mxu0 %v4652_v4  ;;  %3730 = vmatprep.mubr.msk.bf16.mxu0 %vm3913_vm0, %v3912_v2 }
0x1b61   :  { %3725 = vmatmul.mubr.msk.bf16.vlgmr.msra.gmra.mxu1 %vm2577_vm10, %v2710_v54 }
0x1b62   :  { %3735 = vmatpush3.bf16.msra.mxu1 %v4660_v10  ;;  %3736 = vmatprep.mubr.msk.bf16.mxu1 %vm3913_vm0, %v3912_v2 }
0x1b67   :  { %3731 = vmatmul.mubr.msk.bf16.vlgmr.msra.gmra.mxu0 %vm2577_vm10, %v2711_v59 }
0x1b69   :  { %3737 = vmatmul.mubr.msk.bf16.vlgmr.msra.gmra.mxu1 %vm2577_vm10, %v2712_v60 }
0x1c0f   :  { %v2751_v4 = vpop.f32.mrf.mxu0 }
0x1c11   :  { %v3696_v33 = vpop.f32.mrf.mxu0  ;;  %v2795_v8 = vpop.f32.mrf.mxu1 }
0x1c12   :  { %v3073_v11 = vrot.slane %v2795_v8, 7 }
0x1c13   :  { %v2754_v35 = vpop.f32.mrf.mxu0  ;;  %v3702_v39 = vpop.f32.mrf.mxu1 }
0x1c14   :  { %v3074_v18 = vsel %vm2556_vm3, %v3073_v11, %v2751_v4  ;;  %v3089_v20 = vsel %vm2559_vm4, %v3073_v11, %v2751_v4 }
0x1c15   :  { %v3697_v43 = vpop.f32.mrf.mxu0  ;;  %v2798_v10 = vpop.f32.mrf.mxu1 }
0x1c17   :  { %v3703_v47 = vpop.f32.mrf.mxu1  ;;  %v2839_v55 = vpop.f32.mrf.mxu0 }
0x1c18   :  { %v3075_v15 = vrot.slane %v2839_v55, 6 }
0x1c19   :  { %v3708_v62 = vpop.f32.mrf.mxu0  ;;  %v2883_v61 = vpop.f32.mrf.mxu1 }
0x1c1a   :  { %v3077_v14 = vrot.slane %v2883_v61, 5  ;;  %v3076_v23 = vsel %vm2559_vm4, %v3075_v15, %v3074_v18  ;;  %v3090_v24 = vsel %vm2562_vm5, %v3075_v15, %v3089_v20 }
0x1c1b   :  { %v2842_v2 = vpop.f32.mrf.mxu0  ;;  %v3714_v9 = vpop.f32.mrf.mxu1 }
0x1c1c   :  { %v3078_v28 = vsel %vm2562_vm5, %v3077_v14, %v3076_v23  ;;  %v3091_v13 = vsel %vm2565_vm6, %v3077_v14, %v3090_v24 }
0x1c1d   :  { %v3709_v12 = vpop.f32.mrf.mxu0  ;;  %v2886_v6 = vpop.f32.mrf.mxu1 }
0x1c1f   :  { %v3715_v63 = vpop.f32.mrf.mxu1  ;;  %v2927_v17 = vpop.f32.mrf.mxu0 }
0x1c20   :  { %v3079_v25 = vrot.slane %v2927_v17, 4 }
0x1c21   :  { %v3720_v22 = vpop.f32.mrf.mxu0  ;;  %v2971_v3 = vpop.f32.mrf.mxu1 }
0x1c22   :  { %v3081_v29 = vrot.slane %v2971_v3, 3  ;;  %v3080_v56 = vsel %vm2565_vm6, %v3079_v25, %v3078_v28  ;;  %v3092_v0 = vsel %vm2568_vm7, %v3079_v25, %v3091_v13 }
0x1c23   :  { %v2930_v26 = vpop.f32.mrf.mxu0  ;;  %v3726_v27 = vpop.f32.mrf.mxu1 }
0x1c24   :  { %v3082_v40 = vsel %vm2568_vm7, %v3081_v29, %v3080_v56  ;;  %v3093_v41 = vsel %vm2571_vm8, %v3081_v29, %v3092_v0 }
0x1c25   :  { %v3721_v31 = vpop.f32.mrf.mxu0  ;;  %v2974_v16 = vpop.f32.mrf.mxu1 }
0x1c27   :  { %v3727_v32 = vpop.f32.mrf.mxu1  ;;  %v3015_v36 = vpop.f32.mrf.mxu0 }
0x1c28   :  { %v3083_v38 = vrot.slane %v3015_v36, 2 }
0x1c29   :  { %v3732_v42 = vpop.f32.mrf.mxu0  ;;  %v3059_v44 = vpop.f32.mrf.mxu1 }
0x1c2a   :  { %v3084_v46 = vsel %vm2571_vm8, %v3083_v38, %v3082_v40  ;;  %v3094_v51 = vsel %vm2574_vm9, %v3083_v38, %v3093_v41  ;;  %v3085_v57 = vrot.slane %v3059_v44, 1 }
0x1c2b   :  { %3098 = vst.msk [vmem:[%s4793_s14 - $0x1] sm:$0xfe] %vm3097_vm12, %v3094_v51  ;;  %v3018_v48 = vpop.f32.mrf.mxu0  ;;  %v3738_v1 = vpop.f32.mrf.mxu1 }
0x1c2c   :  { %v3086_v49 = vsel %vm2574_vm9, %v3085_v57, %v3084_v46  ;;  %3100 = vst.msk [vmem:[%s4793_s14 + $0x7] sm:$0x1] %vm3099_vm13, %v3085_v57 }
0x1c2d   :  { %3088 = vst.msk [vmem:[%s4794_s13] sm:$0xff] %vm411_vm2, %v3086_v49  ;;  %v3733_v50 = vpop.f32.mrf.mxu0  ;;  %v3062_v52 = vpop.f32.mrf.mxu1 }
0x1c2f   :  { %v3739_v34 = vpop.f32.mrf.mxu1 }

</bundles_post_ra>
